<compile_context>
chip_gen: v7x
topology: tpu7x:2x2x1
jax: 0.10.0
libtpu: 0.0.40
codegen_flags: <defaults>
</compile_context>

<pallas_src>
import numpy as np
import jax
import jax.numpy as jnp
from jax import lax
from jax.experimental import pallas as pl
from jax.experimental.pallas import tpu as pltpu

# ----- LeNet-5 default hyper-parameters (mirror the PyTorch module defaults) -----
DIM = 32          # input spatial size
C_IN = 1          # input channels
C1 = 6            # conv1 output channels
C2 = 16           # conv2 output channels
K = 5             # conv kernel size (stride 1, no padding, no dilation)
FC1 = 120
FC2 = 84
NCLASSES = 10

H1 = 28           # conv1 output spatial
P1 = 14           # pool1 output spatial
H2 = 10           # conv2 output spatial
P2 = 5            # pool2 output spatial
FLAT = C2 * P2 * P2   # 400

LANE = 128        # TPU lane width


# --------------------------------- fused kernel ----------------------------------
def _lenet5_kernel(x_ref, band1_ref, bias1_ref, band2_ref, bias2_ref,
                   fw1_ref, fb1_ref, fw2_ref, fb2_ref, fw3_ref, fb3_ref,
                   x1_ref, x2_ref, x3_ref, x4_ref, x6_ref, x7_ref, x8_ref):
    bt = x_ref.shape[0]                                  # batch tile (multiple of 8)
    mm = band1_ref.dtype                                 # matmul operand dtype (f32 / bf16)
    xf = x_ref[...]                                      # (bt, 1024) lane-dense input

    # ---- conv1 + bias + ReLU: ONE MXU matmul, rows ordered (h, b), K = 160 ----
    lhs1 = jnp.concatenate(
        [xf[:, h * DIM: h * DIM + K * DIM] for h in range(H1)], axis=0)   # (H1*bt, 160)
    y1 = jnp.dot(lhs1.astype(mm), band1_ref[...],
                 preferred_element_type=jnp.float32)                      # (H1*bt, 256)
    y1 = jnp.maximum(y1 + bias1_ref[...], 0.0)           # cols: [even-w | odd-w] 128-halves
    x1_ref[...] = y1.reshape(H1, bt, 2 * LANE)           # free split (bt % 8 == 0), unmasked

    # ---- maxpool 2x2 #1: aligned lane-half max (W) + contiguous row-block max (H) ----
    p1w = jnp.maximum(y1[:, :LANE], y1[:, LANE:])        # (H1*bt, 128)
    t1 = p1w.reshape(P1, 2 * bt, LANE)
    y2 = jnp.maximum(t1[:, :bt, :], t1[:, bt:, :])       # (P1, bt, 128), rows (hp, b)
    x2_ref[...] = y2
    y2f = y2.reshape(P1 * bt, LANE)

    # ---- conv2 + bias + ReLU: ONE MXU matmul, 128-aligned lane concat, K = 640 ----
    lhs2 = jnp.concatenate(
        [y2f[ki * bt:(ki + H2) * bt, :] for ki in range(K)], axis=1)      # (H2*bt, 640)
    y3 = jnp.dot(lhs2.astype(mm), band2_ref[...],
                 preferred_element_type=jnp.float32)                      # (H2*bt, 256)
    y3 = jnp.maximum(y3 + bias2_ref[...], 0.0)
    x3_ref[...] = y3.reshape(H2, bt, 2 * LANE)

    # ---- maxpool 2x2 #2 ----
    p2w = jnp.maximum(y3[:, :LANE], y3[:, LANE:])        # (H2*bt, 128)
    t2 = p2w.reshape(P2, 2 * bt, LANE)
    y4 = jnp.maximum(t2[:, :bt, :], t2[:, bt:, :])       # (P2, bt, 128), rows (hp2, b)
    x4_ref[...] = y4

    # ---- FC stack: per-sample flatten = 128-aligned lane concat of the P2 row blocks ----
    flat = jnp.concatenate([y4[i] for i in range(P2)], axis=1)            # (bt, 640)
    f1 = jnp.maximum(jnp.dot(flat.astype(mm), fw1_ref[...],
                             preferred_element_type=jnp.float32) + fb1_ref[...], 0.0)
    x6_ref[...] = f1                                     # (bt, 120)
    f2 = jnp.maximum(jnp.dot(f1.astype(mm), fw2_ref[...],
                             preferred_element_type=jnp.float32) + fb2_ref[...], 0.0)
    x7_ref[...] = f2                                     # (bt, 84)
    x8_ref[...] = (jnp.dot(f2.astype(mm), fw3_ref[...],
                           preferred_element_type=jnp.float32) + fb3_ref[...])


# ------------------- wrapper-side weight preprocessing (tiny XLA glue) ------------
def _make_band1(conv1_w):
    """(160, 256): row = dh*32 + w_in, col = (w%2)*128 + (w//2)*C1 + co (84 valid per half)."""
    w1 = conv1_w[:, 0]                                                    # (C1, K, K)
    sel = (np.arange(DIM)[None, :, None] ==
           np.arange(H1)[None, None, :] + np.arange(K)[:, None, None]).astype(np.float32)
    t = jnp.einsum('cij,jkw->ikwc', w1, jnp.asarray(sel),
                   precision=lax.Precision.HIGHEST)                       # (K, DIM, H1, C1)
    t = t.reshape(K, DIM, P1, 2, C1).transpose(0, 1, 3, 2, 4)             # (dh, w_in, p, w2, co)
    t = t.reshape(K, DIM, 2, P1 * C1)
    t = jnp.pad(t, ((0, 0), (0, 0), (0, 0), (0, LANE - P1 * C1)))
    return t.reshape(K * DIM, 2 * LANE)


def _make_band2(conv2_w):
    """(640, 256): row = ki*128 + w1*C1 + ci (zero-padded to 128/ki), col = (v%2)*128 + (v//2)*C2 + co."""
    sel = (np.arange(P1)[None, :, None] ==
           np.arange(H2)[None, None, :] + np.arange(K)[:, None, None]).astype(np.float32)
    t = jnp.einsum('dcij,jwv->iwcvd', conv2_w, jnp.asarray(sel),
                   precision=lax.Precision.HIGHEST)                       # (K, P1, C1, H2, C2)
    t = t.reshape(K, P1 * C1, H2, C2)
    t = jnp.pad(t, ((0, 0), (0, LANE - P1 * C1), (0, 0), (0, 0)))
    t = t.reshape(K, LANE, P2, 2, C2).transpose(0, 1, 3, 2, 4)            # (ki, row, pv, v2, co)
    t = t.reshape(K, LANE, 2, P2 * C2)
    t = jnp.pad(t, ((0, 0), (0, 0), (0, 0), (0, LANE - P2 * C2)))
    return t.reshape(K * LANE, 2 * LANE)


def _make_fc1(fc1_w):
    """(640, 120): row = hp2*128 + w2*C2 + c (zero-padded), matching the kernel flatten."""
    t = fc1_w.reshape(FC1, C2, P2, P2).transpose(2, 3, 1, 0)              # (hp2, w2, c, out)
    t = t.reshape(P2, P2 * C2, FC1)
    t = jnp.pad(t, ((0, 0), (0, LANE - P2 * C2), (0, 0)))
    return t.reshape(P2 * LANE, FC1)


def _make_bias_cols(bias, reps):
    """Bias broadcast over the padded conv-output column layout -> (1, 256)."""
    v = jnp.pad(jnp.tile(bias, reps), (0, LANE - reps * bias.shape[0]))
    return jnp.concatenate([v, v]).reshape(1, 2 * LANE)


# ----------------------------------- wrapper -------------------------------------
def lenet5_forward(x, params, block_batch=64, use_bf16_matmul=False):
    """x: (N, 1, 32, 32) float32, NCHW. Returns (x8, x1, ..., x7) like the PyTorch module.

    block_batch: samples per grid step (rounded to a multiple of 8). Default 64 fits the
    default scoped VMEM on every generation; push to 128-256 on v6e (128 MiB VMEM).
    use_bf16_matmul: cast MXU operands to bf16 (v6e/v7x); accumulation/stores stay f32.
    """
    n = x.shape[0]
    assert x.shape[1:] == (C_IN, DIM, DIM), "kernel specializes the module defaults"
    xs = x.reshape(n, DIM * DIM)                          # lane-dense input rows

    bt = max(8, min(int(block_batch), n))
    if n >= 16:                                           # keep >= 2 grid steps (v7x: 2 TCs)
        bt = min(bt, -(-((n + 1) // 2) // 8) * 8)
    bt = -(-bt // 8) * 8
    n_pad = -(-n // bt) * bt
    if n_pad != n:
        xs = jnp.pad(xs, ((0, n_pad - n), (0, 0)))

    mm_dtype = jnp.bfloat16 if use_bf16_matmul else jnp.float32
    band1 = _make_band1(params["conv1_w"]).astype(mm_dtype)
    band2 = _make_band2(params["conv2_w"]).astype(mm_dtype)
    fw1 = _make_fc1(params["fc1_w"]).astype(mm_dtype)
    fw2 = params["fc2_w"].T.astype(mm_dtype)
    fw3 = params["fc3_w"].T.astype(mm_dtype)
    bias1 = _make_bias_cols(params["conv1_b"], P1)
    bias2 = _make_bias_cols(params["conv2_b"], P2)
    fb1 = params["fc1_b"].reshape(1, FC1)
    fb2 = params["fc2_b"].reshape(1, FC2)
    fb3 = params["fc3_b"].reshape(1, NCLASSES)

    grid = (n_pad // bt,)
    wmap = lambda i: (0, 0)                               # VMEM-resident weights

    x1o, x2o, x3o, x4o, x6o, x7o, x8o = pl.pallas_call(
        _lenet5_kernel,
        grid=grid,
        in_specs=[
            pl.BlockSpec((bt, DIM * DIM), lambda i: (i, 0)),
            pl.BlockSpec((K * DIM, 2 * LANE), wmap),      # band1
            pl.BlockSpec((1, 2 * LANE), wmap),            # bias1
            pl.BlockSpec((K * LANE, 2 * LANE), wmap),     # band2
            pl.BlockSpec((1, 2 * LANE), wmap),            # bias2
            pl.BlockSpec((P2 * LANE, FC1), wmap),         # fc1 (permuted, zero-padded)
            pl.BlockSpec((1, FC1), wmap),
            pl.BlockSpec((FC1, FC2), wmap),               # fc2
            pl.BlockSpec((1, FC2), wmap),
            pl.BlockSpec((FC2, NCLASSES), wmap),          # fc3
            pl.BlockSpec((1, NCLASSES), wmap),
        ],
        out_specs=[
            pl.BlockSpec((H1, bt, 2 * LANE), lambda i: (0, i, 0)),
            pl.BlockSpec((P1, bt, LANE), lambda i: (0, i, 0)),
            pl.BlockSpec((H2, bt, 2 * LANE), lambda i: (0, i, 0)),
            pl.BlockSpec((P2, bt, LANE), lambda i: (0, i, 0)),
            pl.BlockSpec((bt, FC1), lambda i: (i, 0)),
            pl.BlockSpec((bt, FC2), lambda i: (i, 0)),
            pl.BlockSpec((bt, NCLASSES), lambda i: (i, 0)),
        ],
        out_shape=(
            jax.ShapeDtypeStruct((H1, n_pad, 2 * LANE), jnp.float32),
            jax.ShapeDtypeStruct((P1, n_pad, LANE), jnp.float32),
            jax.ShapeDtypeStruct((H2, n_pad, 2 * LANE), jnp.float32),
            jax.ShapeDtypeStruct((P2, n_pad, LANE), jnp.float32),
            jax.ShapeDtypeStruct((n_pad, FC1), jnp.float32),
            jax.ShapeDtypeStruct((n_pad, FC2), jnp.float32),
            jax.ShapeDtypeStruct((n_pad, NCLASSES), jnp.float32),
        ),
        compiler_params=pltpu.CompilerParams(
            dimension_semantics=("parallel",),
            vmem_limit_bytes=48 * 1024 * 1024),
    )(xs, band1, bias1, band2, bias2, fw1, fb1, fw2, fb2, fw3, fb3)

    # Decode the kernel's (h, batch)-ordered lane-dense slabs back to PyTorch NCHW
    # (cheap XLA reshuffles of small tensors, outside the kernel's critical path).
    x1 = (x1o[:, :n].reshape(H1, n, 2, LANE)[..., :P1 * C1]
          .reshape(H1, n, 2, P1, C1).transpose(1, 4, 0, 3, 2).reshape(n, C1, H1, H1))
    x2 = x2o[:, :n, :P1 * C1].reshape(P1, n, P1, C1).transpose(1, 3, 0, 2)
    x3 = (x3o[:, :n].reshape(H2, n, 2, LANE)[..., :P2 * C2]
          .reshape(H2, n, 2, P2, C2).transpose(1, 4, 0, 3, 2).reshape(n, C2, H2, H2))
    x4 = x4o[:, :n, :P2 * C2].reshape(P2, n, P2, C2).transpose(1, 3, 0, 2)
    x5 = x4.reshape(n, FLAT)                              # == torch x4.view(nsamples, -1)
    return (x8o[:n], x1, x2, x3, x4, x5, x6o[:n], x7o[:n])


# ------------------------- pure-JAX reference (for checking) ---------------------
def _reference_forward(x, params):
    n = x.shape[0]
    hp = lax.Precision.HIGHEST
    x1 = jax.nn.relu(lax.conv_general_dilated(
        x, params["conv1_w"], (1, 1), "VALID",
        dimension_numbers=("NCHW", "OIHW", "NCHW"), precision=hp)
        + params["conv1_b"][None, :, None, None])
    x2 = lax.reduce_window(x1, -jnp.inf, lax.max, (1, 1, 2, 2), (1, 1, 2, 2), "VALID")
    x3 = jax.nn.relu(lax.conv_general_dilated(
        x2, params["conv2_w"], (1, 1), "VALID",
        dimension_numbers=("NCHW", "OIHW", "NCHW"), precision=hp)
        + params["conv2_b"][None, :, None, None])
    x4 = lax.reduce_window(x3, -jnp.inf, lax.max, (1, 1, 2, 2), (1, 1, 2, 2), "VALID")
    x5 = x4.reshape(n, -1)
    x6 = jax.nn.relu(jnp.dot(x5, params["fc1_w"].T, precision=hp) + params["fc1_b"])
    x7 = jax.nn.relu(jnp.dot(x6, params["fc2_w"].T, precision=hp) + params["fc2_b"])
    x8 = jnp.dot(x7, params["fc3_w"].T, precision=hp) + params["fc3_b"]
    return (x8, x1, x2, x3, x4, x5, x6, x7)


# ------------------------- deterministic parameter init --------------------------
def init_params(key):
    ks = jax.random.split(key, 10)

    def u(k, shape, fan_in):
        bound = 1.0 / (fan_in ** 0.5)
        return jax.random.uniform(k, shape, jnp.float32, -bound, bound)

    return {
        "conv1_w": u(ks[0], (C1, C_IN, K, K), C_IN * K * K),
        "conv1_b": u(ks[1], (C1,), C_IN * K * K),
        "conv2_w": u(ks[2], (C2, C1, K, K), C1 * K * K),
        "conv2_b": u(ks[3], (C2,), C1 * K * K),
        "fc1_w": u(ks[4], (FC1, FLAT), FLAT),
        "fc1_b": u(ks[5], (FC1,), FLAT),
        "fc2_w": u(ks[6], (FC2, FC1), FC1),
        "fc2_b": u(ks[7], (FC2,), FC1),
        "fc3_w": u(ks[8], (NCLASSES, FC2), FC2),
        "fc3_b": u(ks[9], (NCLASSES,), FC2),
    }


if __name__ == "__main__":
    key = jax.random.PRNGKey(0)
    pkey, xkey = jax.random.split(key)
    params = init_params(pkey)
    # LeNet-5 default geometry requires 32x32 single-channel inputs; batch = 2.
    x = jax.random.normal(xkey, (2, C_IN, DIM, DIM), jnp.float32)

    outs = jax.block_until_ready(jax.jit(lenet5_forward)(x, params))
    refs = jax.block_until_ready(jax.jit(_reference_forward)(x, params))

    expected = [
        (2, NCLASSES), (2, C1, H1, H1), (2, C1, P1, P1), (2, C2, H2, H2),
        (2, C2, P2, P2), (2, FLAT), (2, FC1), (2, FC2),
    ]
    got = [tuple(o.shape) for o in outs]
    assert got == expected, f"shape mismatch: {got}"

    # All-f32 path: 1e-2 is >20x below any layout/permutation-bug error (O(0.2)..O(3))
    # while still tolerating MXU matmul precision-mode differences vs the XLA reference.
    names = ["x8", "x1", "x2", "x3", "x4", "x5", "x6", "x7"]
    for name, o, r in zip(names, outs, refs):
        err = float(jnp.max(jnp.abs(o - r)))
        assert err < 1e-2, f"{name} mismatch: max abs err {err}"
    print("KERNEL_OK")
</pallas_src>

<mosaic_0001>
module attributes {stable_mosaic.version = 11 : i64} {
  func.func @_lenet5_kernel(%arg0: i32, %arg1: memref<8x1024xf32, #tpu.memory_space<vmem>>, %arg2: memref<160x256xf32, #tpu.memory_space<vmem>>, %arg3: memref<1x256xf32, #tpu.memory_space<vmem>>, %arg4: memref<640x256xf32, #tpu.memory_space<vmem>>, %arg5: memref<1x256xf32, #tpu.memory_space<vmem>>, %arg6: memref<640x120xf32, #tpu.memory_space<vmem>>, %arg7: memref<1x120xf32, #tpu.memory_space<vmem>>, %arg8: memref<120x84xf32, #tpu.memory_space<vmem>>, %arg9: memref<1x84xf32, #tpu.memory_space<vmem>>, %arg10: memref<84x10xf32, #tpu.memory_space<vmem>>, %arg11: memref<1x10xf32, #tpu.memory_space<vmem>>, %arg12: memref<28x8x256xf32, #tpu.memory_space<vmem>>, %arg13: memref<14x8x128xf32, #tpu.memory_space<vmem>>, %arg14: memref<10x8x256xf32, #tpu.memory_space<vmem>>, %arg15: memref<5x8x128xf32, #tpu.memory_space<vmem>>, %arg16: memref<8x120xf32, #tpu.memory_space<vmem>>, %arg17: memref<8x84xf32, #tpu.memory_space<vmem>>, %arg18: memref<8x10xf32, #tpu.memory_space<vmem>>) attributes {dimension_semantics = [#tpu.dimension_semantics<parallel>], iteration_bounds = array<i64: 1>, scalar_prefetch = 0 : i64, scratch_operands = 0 : i64, tpu.core_type = #tpu.core_type<tc>, window_params = [{transform_indices = @transform_0, window_bounds = array<i64: 8, 1024>}, {pipeline_mode = #tpu.pipeline_mode<synchronous>, transform_indices = @transform_1, window_bounds = array<i64: 160, 256>}, {pipeline_mode = #tpu.pipeline_mode<synchronous>, transform_indices = @transform_2, window_bounds = array<i64: 1, 256>}, {pipeline_mode = #tpu.pipeline_mode<synchronous>, transform_indices = @transform_3, window_bounds = array<i64: 640, 256>}, {pipeline_mode = #tpu.pipeline_mode<synchronous>, transform_indices = @transform_4, window_bounds = array<i64: 1, 256>}, {pipeline_mode = #tpu.pipeline_mode<synchronous>, transform_indices = @transform_5, window_bounds = array<i64: 640, 120>}, {pipeline_mode = #tpu.pipeline_mode<synchronous>, transform_indices = @transform_6, window_bounds = array<i64: 1, 120>}, {pipeline_mode = #tpu.pipeline_mode<synchronous>, transform_indices = @transform_7, window_bounds = array<i64: 120, 84>}, {pipeline_mode = #tpu.pipeline_mode<synchronous>, transform_indices = @transform_8, window_bounds = array<i64: 1, 84>}, {pipeline_mode = #tpu.pipeline_mode<synchronous>, transform_indices = @transform_9, window_bounds = array<i64: 84, 10>}, {pipeline_mode = #tpu.pipeline_mode<synchronous>, transform_indices = @transform_10, window_bounds = array<i64: 1, 10>}, {transform_indices = @transform_11, window_bounds = array<i64: 28, 8, 256>}, {transform_indices = @transform_12, window_bounds = array<i64: 14, 8, 128>}, {transform_indices = @transform_13, window_bounds = array<i64: 10, 8, 256>}, {transform_indices = @transform_14, window_bounds = array<i64: 5, 8, 128>}, {transform_indices = @transform_15, window_bounds = array<i64: 8, 120>}, {transform_indices = @transform_16, window_bounds = array<i64: 8, 84>}, {transform_indices = @transform_17, window_bounds = array<i64: 8, 10>}]} {
    %c0 = arith.constant 0 : index
    %c0_0 = arith.constant 0 : index
    %0 = vector.load %arg1[%c0, %c0_0] : memref<8x1024xf32, #tpu.memory_space<vmem>>, vector<8x1024xf32>
    %1 = vector.extract_strided_slice %0 {offsets = [0, 0], sizes = [8, 160], strides = [1, 1]} : vector<8x1024xf32> to vector<8x160xf32>
    %2 = vector.extract_strided_slice %0 {offsets = [0, 32], sizes = [8, 160], strides = [1, 1]} : vector<8x1024xf32> to vector<8x160xf32>
    %3 = vector.extract_strided_slice %0 {offsets = [0, 64], sizes = [8, 160], strides = [1, 1]} : vector<8x1024xf32> to vector<8x160xf32>
    %4 = vector.extract_strided_slice %0 {offsets = [0, 96], sizes = [8, 160], strides = [1, 1]} : vector<8x1024xf32> to vector<8x160xf32>
    %5 = vector.extract_strided_slice %0 {offsets = [0, 128], sizes = [8, 160], strides = [1, 1]} : vector<8x1024xf32> to vector<8x160xf32>
    %6 = vector.extract_strided_slice %0 {offsets = [0, 160], sizes = [8, 160], strides = [1, 1]} : vector<8x1024xf32> to vector<8x160xf32>
    %7 = vector.extract_strided_slice %0 {offsets = [0, 192], sizes = [8, 160], strides = [1, 1]} : vector<8x1024xf32> to vector<8x160xf32>
    %8 = vector.extract_strided_slice %0 {offsets = [0, 224], sizes = [8, 160], strides = [1, 1]} : vector<8x1024xf32> to vector<8x160xf32>
    %9 = vector.extract_strided_slice %0 {offsets = [0, 256], sizes = [8, 160], strides = [1, 1]} : vector<8x1024xf32> to vector<8x160xf32>
    %10 = vector.extract_strided_slice %0 {offsets = [0, 288], sizes = [8, 160], strides = [1, 1]} : vector<8x1024xf32> to vector<8x160xf32>
    %11 = vector.extract_strided_slice %0 {offsets = [0, 320], sizes = [8, 160], strides = [1, 1]} : vector<8x1024xf32> to vector<8x160xf32>
    %12 = vector.extract_strided_slice %0 {offsets = [0, 352], sizes = [8, 160], strides = [1, 1]} : vector<8x1024xf32> to vector<8x160xf32>
    %13 = vector.extract_strided_slice %0 {offsets = [0, 384], sizes = [8, 160], strides = [1, 1]} : vector<8x1024xf32> to vector<8x160xf32>
    %14 = vector.extract_strided_slice %0 {offsets = [0, 416], sizes = [8, 160], strides = [1, 1]} : vector<8x1024xf32> to vector<8x160xf32>
    %15 = vector.extract_strided_slice %0 {offsets = [0, 448], sizes = [8, 160], strides = [1, 1]} : vector<8x1024xf32> to vector<8x160xf32>
    %16 = vector.extract_strided_slice %0 {offsets = [0, 480], sizes = [8, 160], strides = [1, 1]} : vector<8x1024xf32> to vector<8x160xf32>
    %17 = vector.extract_strided_slice %0 {offsets = [0, 512], sizes = [8, 160], strides = [1, 1]} : vector<8x1024xf32> to vector<8x160xf32>
    %18 = vector.extract_strided_slice %0 {offsets = [0, 544], sizes = [8, 160], strides = [1, 1]} : vector<8x1024xf32> to vector<8x160xf32>
    %19 = vector.extract_strided_slice %0 {offsets = [0, 576], sizes = [8, 160], strides = [1, 1]} : vector<8x1024xf32> to vector<8x160xf32>
    %20 = vector.extract_strided_slice %0 {offsets = [0, 608], sizes = [8, 160], strides = [1, 1]} : vector<8x1024xf32> to vector<8x160xf32>
    %21 = vector.extract_strided_slice %0 {offsets = [0, 640], sizes = [8, 160], strides = [1, 1]} : vector<8x1024xf32> to vector<8x160xf32>
    %22 = vector.extract_strided_slice %0 {offsets = [0, 672], sizes = [8, 160], strides = [1, 1]} : vector<8x1024xf32> to vector<8x160xf32>
    %23 = vector.extract_strided_slice %0 {offsets = [0, 704], sizes = [8, 160], strides = [1, 1]} : vector<8x1024xf32> to vector<8x160xf32>
    %24 = vector.extract_strided_slice %0 {offsets = [0, 736], sizes = [8, 160], strides = [1, 1]} : vector<8x1024xf32> to vector<8x160xf32>
    %25 = vector.extract_strided_slice %0 {offsets = [0, 768], sizes = [8, 160], strides = [1, 1]} : vector<8x1024xf32> to vector<8x160xf32>
    %26 = vector.extract_strided_slice %0 {offsets = [0, 800], sizes = [8, 160], strides = [1, 1]} : vector<8x1024xf32> to vector<8x160xf32>
    %27 = vector.extract_strided_slice %0 {offsets = [0, 832], sizes = [8, 160], strides = [1, 1]} : vector<8x1024xf32> to vector<8x160xf32>
    %28 = vector.extract_strided_slice %0 {offsets = [0, 864], sizes = [8, 160], strides = [1, 1]} : vector<8x1024xf32> to vector<8x160xf32>
    %29 = tpu.concatenate %1, %2, %3, %4, %5, %6, %7, %8, %9, %10, %11, %12, %13, %14, %15, %16 in 0 : vector<8x160xf32>, vector<8x160xf32>, vector<8x160xf32>, vector<8x160xf32>, vector<8x160xf32>, vector<8x160xf32>, vector<8x160xf32>, vector<8x160xf32>, vector<8x160xf32>, vector<8x160xf32>, vector<8x160xf32>, vector<8x160xf32>, vector<8x160xf32>, vector<8x160xf32>, vector<8x160xf32>, vector<8x160xf32> -> vector<128x160xf32>
    %30 = tpu.concatenate %17, %18, %19, %20, %21, %22, %23, %24, %25, %26, %27, %28 in 0 : vector<8x160xf32>, vector<8x160xf32>, vector<8x160xf32>, vector<8x160xf32>, vector<8x160xf32>, vector<8x160xf32>, vector<8x160xf32>, vector<8x160xf32>, vector<8x160xf32>, vector<8x160xf32>, vector<8x160xf32>, vector<8x160xf32> -> vector<96x160xf32>
    %31 = tpu.concatenate %29, %30 in 0 : vector<128x160xf32>, vector<96x160xf32> -> vector<224x160xf32>
    %c0_1 = arith.constant 0 : index
    %c0_2 = arith.constant 0 : index
    %32 = vector.load %arg2[%c0_1, %c0_2] : memref<160x256xf32, #tpu.memory_space<vmem>>, vector<160x256xf32>
    %cst = arith.constant dense<0.000000e+00> : vector<224x256xf32>
    %33 = tpu.matmul %31, %32, %cst {dimension_numbers = #tpu.dot_dimension_numbers<[1], [0], [0], [1], [0, 0, 1, 1], [], []>} : vector<224x160xf32>, vector<160x256xf32>, vector<224x256xf32> -> vector<224x256xf32>
    %c0_3 = arith.constant 0 : index
    %c0_4 = arith.constant 0 : index
    %34 = vector.load %arg3[%c0_3, %c0_4] : memref<1x256xf32, #tpu.memory_space<vmem>>, vector<1x256xf32>
    %35 = vector.broadcast %34 : vector<1x256xf32> to vector<224x256xf32>
    %36 = arith.addf %33, %35 : vector<224x256xf32>
    %cst_5 = arith.constant 0.000000e+00 : f32
    %37 = vector.broadcast %cst_5 : f32 to vector<224x256xf32>
    %38 = arith.maximumf %36, %37 : vector<224x256xf32>
    %39 = vector.shape_cast %38 : vector<224x256xf32> to vector<28x8x256xf32>
    %c0_6 = arith.constant 0 : index
    %c0_7 = arith.constant 0 : index
    %c0_8 = arith.constant 0 : index
    %40 = vector.load %arg12[%c0_6, %c0_7, %c0_8] : memref<28x8x256xf32, #tpu.memory_space<vmem>>, vector<28x8x256xf32>
    tpu.vector_store %arg12[%c0_6, %c0_7, %c0_8], %39 {strides = array<i32>} : memref<28x8x256xf32, #tpu.memory_space<vmem>>, vector<28x8x256xf32>,
    %41 = vector.extract_strided_slice %38 {offsets = [0, 0], sizes = [224, 128], strides = [1, 1]} : vector<224x256xf32> to vector<224x128xf32>
    %42 = vector.extract_strided_slice %38 {offsets = [0, 128], sizes = [224, 128], strides = [1, 1]} : vector<224x256xf32> to vector<224x128xf32>
    %43 = arith.maximumf %41, %42 : vector<224x128xf32>
    %44 = vector.shape_cast %43 : vector<224x128xf32> to vector<14x16x128xf32>
    %45 = vector.extract_strided_slice %44 {offsets = [0, 0, 0], sizes = [14, 8, 128], strides = [1, 1, 1]} : vector<14x16x128xf32> to vector<14x8x128xf32>
    %46 = vector.extract_strided_slice %44 {offsets = [0, 8, 0], sizes = [14, 8, 128], strides = [1, 1, 1]} : vector<14x16x128xf32> to vector<14x8x128xf32>
    %47 = arith.maximumf %45, %46 : vector<14x8x128xf32>
    %c0_9 = arith.constant 0 : index
    %c0_10 = arith.constant 0 : index
    %c0_11 = arith.constant 0 : index
    %48 = vector.load %arg13[%c0_9, %c0_10, %c0_11] : memref<14x8x128xf32, #tpu.memory_space<vmem>>, vector<14x8x128xf32>
    tpu.vector_store %arg13[%c0_9, %c0_10, %c0_11], %47 {strides = array<i32>} : memref<14x8x128xf32, #tpu.memory_space<vmem>>, vector<14x8x128xf32>,
    %49 = vector.shape_cast %47 : vector<14x8x128xf32> to vector<112x128xf32>
    %50 = vector.extract_strided_slice %49 {offsets = [0, 0], sizes = [80, 128], strides = [1, 1]} : vector<112x128xf32> to vector<80x128xf32>
    %51 = vector.extract_strided_slice %49 {offsets = [8, 0], sizes = [80, 128], strides = [1, 1]} : vector<112x128xf32> to vector<80x128xf32>
    %52 = vector.extract_strided_slice %49 {offsets = [16, 0], sizes = [80, 128], strides = [1, 1]} : vector<112x128xf32> to vector<80x128xf32>
    %53 = vector.extract_strided_slice %49 {offsets = [24, 0], sizes = [80, 128], strides = [1, 1]} : vector<112x128xf32> to vector<80x128xf32>
    %54 = vector.extract_strided_slice %49 {offsets = [32, 0], sizes = [80, 128], strides = [1, 1]} : vector<112x128xf32> to vector<80x128xf32>
    %55 = tpu.concatenate %50, %51, %52, %53, %54 in 1 : vector<80x128xf32>, vector<80x128xf32>, vector<80x128xf32>, vector<80x128xf32>, vector<80x128xf32> -> vector<80x640xf32>
    %c0_12 = arith.constant 0 : index
    %c0_13 = arith.constant 0 : index
    %56 = vector.load %arg4[%c0_12, %c0_13] : memref<640x256xf32, #tpu.memory_space<vmem>>, vector<640x256xf32>
    %cst_14 = arith.constant dense<0.000000e+00> : vector<80x256xf32>
    %57 = tpu.matmul %55, %56, %cst_14 {dimension_numbers = #tpu.dot_dimension_numbers<[1], [0], [0], [1], [0, 0, 1, 1], [], []>} : vector<80x640xf32>, vector<640x256xf32>, vector<80x256xf32> -> vector<80x256xf32>
    %c0_15 = arith.constant 0 : index
    %c0_16 = arith.constant 0 : index
    %58 = vector.load %arg5[%c0_15, %c0_16] : memref<1x256xf32, #tpu.memory_space<vmem>>, vector<1x256xf32>
    %59 = vector.broadcast %58 : vector<1x256xf32> to vector<80x256xf32>
    %60 = arith.addf %57, %59 : vector<80x256xf32>
    %cst_17 = arith.constant 0.000000e+00 : f32
    %61 = vector.broadcast %cst_17 : f32 to vector<80x256xf32>
    %62 = arith.maximumf %60, %61 : vector<80x256xf32>
    %63 = vector.shape_cast %62 : vector<80x256xf32> to vector<10x8x256xf32>
    %c0_18 = arith.constant 0 : index
    %c0_19 = arith.constant 0 : index
    %c0_20 = arith.constant 0 : index
    %64 = vector.load %arg14[%c0_18, %c0_19, %c0_20] : memref<10x8x256xf32, #tpu.memory_space<vmem>>, vector<10x8x256xf32>
    tpu.vector_store %arg14[%c0_18, %c0_19, %c0_20], %63 {strides = array<i32>} : memref<10x8x256xf32, #tpu.memory_space<vmem>>, vector<10x8x256xf32>,
    %65 = vector.extract_strided_slice %62 {offsets = [0, 0], sizes = [80, 128], strides = [1, 1]} : vector<80x256xf32> to vector<80x128xf32>
    %66 = vector.extract_strided_slice %62 {offsets = [0, 128], sizes = [80, 128], strides = [1, 1]} : vector<80x256xf32> to vector<80x128xf32>
    %67 = arith.maximumf %65, %66 : vector<80x128xf32>
    %68 = vector.shape_cast %67 : vector<80x128xf32> to vector<5x16x128xf32>
    %69 = vector.extract_strided_slice %68 {offsets = [0, 0, 0], sizes = [5, 8, 128], strides = [1, 1, 1]} : vector<5x16x128xf32> to vector<5x8x128xf32>
    %70 = vector.extract_strided_slice %68 {offsets = [0, 8, 0], sizes = [5, 8, 128], strides = [1, 1, 1]} : vector<5x16x128xf32> to vector<5x8x128xf32>
    %71 = arith.maximumf %69, %70 : vector<5x8x128xf32>
    %c0_21 = arith.constant 0 : index
    %c0_22 = arith.constant 0 : index
    %c0_23 = arith.constant 0 : index
    %72 = vector.load %arg15[%c0_21, %c0_22, %c0_23] : memref<5x8x128xf32, #tpu.memory_space<vmem>>, vector<5x8x128xf32>
    tpu.vector_store %arg15[%c0_21, %c0_22, %c0_23], %71 {strides = array<i32>} : memref<5x8x128xf32, #tpu.memory_space<vmem>>, vector<5x8x128xf32>,
    %73 = vector.extract_strided_slice %71 {offsets = [0, 0, 0], sizes = [1, 8, 128], strides = [1, 1, 1]} : vector<5x8x128xf32> to vector<1x8x128xf32>
    %74 = vector.shape_cast %73 : vector<1x8x128xf32> to vector<8x128xf32>
    %75 = vector.extract_strided_slice %71 {offsets = [1, 0, 0], sizes = [1, 8, 128], strides = [1, 1, 1]} : vector<5x8x128xf32> to vector<1x8x128xf32>
    %76 = vector.shape_cast %75 : vector<1x8x128xf32> to vector<8x128xf32>
    %77 = vector.extract_strided_slice %71 {offsets = [2, 0, 0], sizes = [1, 8, 128], strides = [1, 1, 1]} : vector<5x8x128xf32> to vector<1x8x128xf32>
    %78 = vector.shape_cast %77 : vector<1x8x128xf32> to vector<8x128xf32>
    %79 = vector.extract_strided_slice %71 {offsets = [3, 0, 0], sizes = [1, 8, 128], strides = [1, 1, 1]} : vector<5x8x128xf32> to vector<1x8x128xf32>
    %80 = vector.shape_cast %79 : vector<1x8x128xf32> to vector<8x128xf32>
    %81 = vector.extract_strided_slice %71 {offsets = [4, 0, 0], sizes = [1, 8, 128], strides = [1, 1, 1]} : vector<5x8x128xf32> to vector<1x8x128xf32>
    %82 = vector.shape_cast %81 : vector<1x8x128xf32> to vector<8x128xf32>
    %83 = tpu.concatenate %74, %76, %78, %80, %82 in 1 : vector<8x128xf32>, vector<8x128xf32>, vector<8x128xf32>, vector<8x128xf32>, vector<8x128xf32> -> vector<8x640xf32>
    %c0_24 = arith.constant 0 : index
    %c0_25 = arith.constant 0 : index
    %84 = vector.load %arg6[%c0_24, %c0_25] : memref<640x120xf32, #tpu.memory_space<vmem>>, vector<640x120xf32>
    %cst_26 = arith.constant dense<0.000000e+00> : vector<8x120xf32>
    %85 = tpu.matmul %83, %84, %cst_26 {dimension_numbers = #tpu.dot_dimension_numbers<[1], [0], [0], [1], [0, 0, 1, 1], [], []>} : vector<8x640xf32>, vector<640x120xf32>, vector<8x120xf32> -> vector<8x120xf32>
    %c0_27 = arith.constant 0 : index
    %c0_28 = arith.constant 0 : index
    %86 = vector.load %arg7[%c0_27, %c0_28] : memref<1x120xf32, #tpu.memory_space<vmem>>, vector<1x120xf32>
    %87 = vector.broadcast %86 : vector<1x120xf32> to vector<8x120xf32>
    %88 = arith.addf %85, %87 : vector<8x120xf32>
    %cst_29 = arith.constant 0.000000e+00 : f32
    %89 = vector.broadcast %cst_29 : f32 to vector<8x120xf32>
    %90 = arith.maximumf %88, %89 : vector<8x120xf32>
    %c0_30 = arith.constant 0 : index
    %c0_31 = arith.constant 0 : index
    %91 = vector.load %arg16[%c0_30, %c0_31] : memref<8x120xf32, #tpu.memory_space<vmem>>, vector<8x120xf32>
    tpu.vector_store %arg16[%c0_30, %c0_31], %90 {strides = array<i32>} : memref<8x120xf32, #tpu.memory_space<vmem>>, vector<8x120xf32>,
    %c0_32 = arith.constant 0 : index
    %c0_33 = arith.constant 0 : index
    %92 = vector.load %arg8[%c0_32, %c0_33] : memref<120x84xf32, #tpu.memory_space<vmem>>, vector<120x84xf32>
    %cst_34 = arith.constant dense<0.000000e+00> : vector<8x84xf32>
    %93 = tpu.matmul %90, %92, %cst_34 {dimension_numbers = #tpu.dot_dimension_numbers<[1], [0], [0], [1], [0, 0, 1, 1], [], []>} : vector<8x120xf32>, vector<120x84xf32>, vector<8x84xf32> -> vector<8x84xf32>
    %c0_35 = arith.constant 0 : index
    %c0_36 = arith.constant 0 : index
    %94 = vector.load %arg9[%c0_35, %c0_36] : memref<1x84xf32, #tpu.memory_space<vmem>>, vector<1x84xf32>
    %95 = vector.broadcast %94 : vector<1x84xf32> to vector<8x84xf32>
    %96 = arith.addf %93, %95 : vector<8x84xf32>
    %cst_37 = arith.constant 0.000000e+00 : f32
    %97 = vector.broadcast %cst_37 : f32 to vector<8x84xf32>
    %98 = arith.maximumf %96, %97 : vector<8x84xf32>
    %c0_38 = arith.constant 0 : index
    %c0_39 = arith.constant 0 : index
    %99 = vector.load %arg17[%c0_38, %c0_39] : memref<8x84xf32, #tpu.memory_space<vmem>>, vector<8x84xf32>
    tpu.vector_store %arg17[%c0_38, %c0_39], %98 {strides = array<i32>} : memref<8x84xf32, #tpu.memory_space<vmem>>, vector<8x84xf32>,
    %c0_40 = arith.constant 0 : index
    %c0_41 = arith.constant 0 : index
    %100 = vector.load %arg10[%c0_40, %c0_41] : memref<84x10xf32, #tpu.memory_space<vmem>>, vector<84x10xf32>
    %cst_42 = arith.constant dense<0.000000e+00> : vector<8x10xf32>
    %101 = tpu.matmul %98, %100, %cst_42 {dimension_numbers = #tpu.dot_dimension_numbers<[1], [0], [0], [1], [0, 0, 1, 1], [], []>} : vector<8x84xf32>, vector<84x10xf32>, vector<8x10xf32> -> vector<8x10xf32>
    %c0_43 = arith.constant 0 : index
    %c0_44 = arith.constant 0 : index
    %102 = vector.load %arg11[%c0_43, %c0_44] : memref<1x10xf32, #tpu.memory_space<vmem>>, vector<1x10xf32>
    %103 = vector.broadcast %102 : vector<1x10xf32> to vector<8x10xf32>
    %104 = arith.addf %101, %103 : vector<8x10xf32>
    %c0_45 = arith.constant 0 : index
    %c0_46 = arith.constant 0 : index
    %105 = vector.load %arg18[%c0_45, %c0_46] : memref<8x10xf32, #tpu.memory_space<vmem>>, vector<8x10xf32>
    tpu.vector_store %arg18[%c0_45, %c0_46], %104 {strides = array<i32>} : memref<8x10xf32, #tpu.memory_space<vmem>>, vector<8x10xf32>,
    return
  }
  func.func @transform_0(%arg0: i32) -> (i32, i32) {
    %c0_i32 = arith.constant 0 : i32
    %c0_i32_0 = arith.constant 0 : i32
    return %arg0, %c0_i32 : i32, i32
  }
  func.func @transform_1(%arg0: i32) -> (i32, i32) {
    %c0_i32 = arith.constant 0 : i32
    %c0_i32_0 = arith.constant 0 : i32
    %c0_i32_1 = arith.constant 0 : i32
    return %c0_i32, %c0_i32_0 : i32, i32
  }
  func.func @transform_2(%arg0: i32) -> (i32, i32) {
    %c0_i32 = arith.constant 0 : i32
    %c0_i32_0 = arith.constant 0 : i32
    %c0_i32_1 = arith.constant 0 : i32
    return %c0_i32, %c0_i32_0 : i32, i32
  }
  func.func @transform_3(%arg0: i32) -> (i32, i32) {
    %c0_i32 = arith.constant 0 : i32
    %c0_i32_0 = arith.constant 0 : i32
    %c0_i32_1 = arith.constant 0 : i32
    return %c0_i32, %c0_i32_0 : i32, i32
  }
  func.func @transform_4(%arg0: i32) -> (i32, i32) {
    %c0_i32 = arith.constant 0 : i32
    %c0_i32_0 = arith.constant 0 : i32
    %c0_i32_1 = arith.constant 0 : i32
    return %c0_i32, %c0_i32_0 : i32, i32
  }
  func.func @transform_5(%arg0: i32) -> (i32, i32) {
    %c0_i32 = arith.constant 0 : i32
    %c0_i32_0 = arith.constant 0 : i32
    %c0_i32_1 = arith.constant 0 : i32
    return %c0_i32, %c0_i32_0 : i32, i32
  }
  func.func @transform_6(%arg0: i32) -> (i32, i32) {
    %c0_i32 = arith.constant 0 : i32
    %c0_i32_0 = arith.constant 0 : i32
    %c0_i32_1 = arith.constant 0 : i32
    return %c0_i32, %c0_i32_0 : i32, i32
  }
  func.func @transform_7(%arg0: i32) -> (i32, i32) {
    %c0_i32 = arith.constant 0 : i32
    %c0_i32_0 = arith.constant 0 : i32
    %c0_i32_1 = arith.constant 0 : i32
    return %c0_i32, %c0_i32_0 : i32, i32
  }
  func.func @transform_8(%arg0: i32) -> (i32, i32) {
    %c0_i32 = arith.constant 0 : i32
    %c0_i32_0 = arith.constant 0 : i32
    %c0_i32_1 = arith.constant 0 : i32
    return %c0_i32, %c0_i32_0 : i32, i32
  }
  func.func @transform_9(%arg0: i32) -> (i32, i32) {
    %c0_i32 = arith.constant 0 : i32
    %c0_i32_0 = arith.constant 0 : i32
    %c0_i32_1 = arith.constant 0 : i32
    return %c0_i32, %c0_i32_0 : i32, i32
  }
  func.func @transform_10(%arg0: i32) -> (i32, i32) {
    %c0_i32 = arith.constant 0 : i32
    %c0_i32_0 = arith.constant 0 : i32
    %c0_i32_1 = arith.constant 0 : i32
    return %c0_i32, %c0_i32_0 : i32, i32
  }
  func.func @transform_11(%arg0: i32) -> (i32, i32, i32) {
    %c0_i32 = arith.constant 0 : i32
    %c0_i32_0 = arith.constant 0 : i32
    %c0_i32_1 = arith.constant 0 : i32
    return %c0_i32, %arg0, %c0_i32_0 : i32, i32, i32
  }
  func.func @transform_12(%arg0: i32) -> (i32, i32, i32) {
    %c0_i32 = arith.constant 0 : i32
    %c0_i32_0 = arith.constant 0 : i32
    %c0_i32_1 = arith.constant 0 : i32
    return %c0_i32, %arg0, %c0_i32_0 : i32, i32, i32
  }
  func.func @transform_13(%arg0: i32) -> (i32, i32, i32) {
    %c0_i32 = arith.constant 0 : i32
    %c0_i32_0 = arith.constant 0 : i32
    %c0_i32_1 = arith.constant 0 : i32
    return %c0_i32, %arg0, %c0_i32_0 : i32, i32, i32
  }
  func.func @transform_14(%arg0: i32) -> (i32, i32, i32) {
    %c0_i32 = arith.constant 0 : i32
    %c0_i32_0 = arith.constant 0 : i32
    %c0_i32_1 = arith.constant 0 : i32
    return %c0_i32, %arg0, %c0_i32_0 : i32, i32, i32
  }
  func.func @transform_15(%arg0: i32) -> (i32, i32) {
    %c0_i32 = arith.constant 0 : i32
    %c0_i32_0 = arith.constant 0 : i32
    return %arg0, %c0_i32 : i32, i32
  }
  func.func @transform_16(%arg0: i32) -> (i32, i32) {
    %c0_i32 = arith.constant 0 : i32
    %c0_i32_0 = arith.constant 0 : i32
    return %arg0, %c0_i32 : i32, i32
  }
  func.func @transform_17(%arg0: i32) -> (i32, i32) {
    %c0_i32 = arith.constant 0 : i32
    %c0_i32_0 = arith.constant 0 : i32
    return %arg0, %c0_i32 : i32, i32
  }
}

</mosaic_0001>

<bundles_post_ra>
// kernel: tile.13
= control target key start
LH: loop header
LB: loop body
LE: loop exit
PB: predicated region body
PF: predicated region fallthrough
CT: control target
= control target key end

     0   :  { %s28_s0 = inlined_call_operand.vmem [shape: f32[6], index: 0, kind: input, shape index: {}]   ;;  %s29_s1 = inlined_call_operand.vmem [shape: f32[14,6], index: 1, kind: output, shape index: {}]  }
   0x1   :  { %v4_v0 = vld [vmem:[%s28_s0] ss:$0 sm:$0xff] }
   0x2   :  { %5 = vst [vmem:[%s29_s1] sm:$0xff] %v4_v0  ;;  %8 = vst [vmem:[%s29_s1 + $0x8] sm:$0xff] %v4_v0 }

// kernel: tile.14
= control target key start
LH: loop header
LB: loop body
LE: loop exit
PB: predicated region body
PF: predicated region fallthrough
CT: control target
= control target key end

     0   :  { %s115_s10 = smov 78   ;;  %s116_s11 = smov 66   ;;  %vm3_vm0 = vcmask 48128   ;;  %vm9_vm1 = vcmask 687728   ;;  %vm15_vm2 = vcmask 638528   ;;  %vm21_vm3 = vcmask 589328   ;;  %s183_s0 = inlined_call_operand.vmem [shape: f32[14,6], index: 0, kind: input, shape index: {}]   ;;  %s184_s1 = inlined_call_operand.vmem [shape: f32[84], index: 1, kind: output, shape index: {}]  }
   0x1   :  { %v89_v0 = vld [vmem:[%s183_s0 + $0xd] sm:$0x1]   ;;  %v91_v1 = vld [vmem:[%s183_s0 + $0xb] sm:$0x1]   ;;  %v90_v2 = vld [vmem:[%s183_s0 + $0xc] sm:$0x1]  }
   0x2   :  { %7 = vrot.lane.b32.xlu0 %v89_v0, %s115_s10  ;;  %19 = vrot.lane.b32.xlu1 %v91_v1, %s116_s11  ;;  %v92_v3 = vld [vmem:[%s183_s0 + $0xa] sm:$0x1]   ;;  %s117_s16 = smov 72   ;;  %s118_s17 = smov 60   ;;  %v93_v4 = vld [vmem:[%s183_s0 + $0x9] sm:$0x1]  }
   0x3   :  { %v94_v5 = vld [vmem:[%s183_s0 + $0x8] sm:$0x1]   ;;  %v2_v6 = vld [vmem:[%s183_s0] sm:$0x1]   ;;  %s119_s24 = smov 54   ;;  %s120_s25 = smov 48  }
   0x4   :  { %4 = vst.msk [vmem:[#allocation0] sm:$0x1] %vm3_vm0, %v2_v6   ;;  %v95_v7 = vld [vmem:[%s183_s0 + $0x7] sm:$0x1]   ;;  %v96_v8 = vld [vmem:[%s183_s0 + $0x6] sm:$0x1]  }
   0x5   :  { %s121_s30 = smov 42   ;;  %s122_s2 = smov 36   ;;  %v97_v9 = vld [vmem:[%s183_s0 + $0x5] sm:$0x1]   ;;  %v98_v10 = vld [vmem:[%s183_s0 + $0x4] sm:$0x1]  }
   0x6   :  { %13 = vrot.lane.b32.xlu0 %v90_v2, %s117_s16  ;;  %25 = vrot.lane.b32.xlu1 %v92_v3, %s118_s17  ;;  %s123_s7 = smov 30   ;;  %s124_s8 = smov 24   ;;  %v99_v11 = vld [vmem:[%s183_s0 + $0x3] sm:$0x1]   ;;  %v100_v12 = vld [vmem:[%s183_s0 + $0x2] sm:$0x1]  }
   0x7   :  { %s125_s13 = smov 18   ;;  %s126_s14 = smov 12   ;;  %v101_v13 = vld [vmem:[%s183_s0 + $0x1] sm:$0x1]   ;;  %vm27_vm4 = vcmask 540128   ;;  %vm33_vm5 = vcmask 490928  }
   0x8   :  { %s127_s0 = smov 6   ;;  %vm39_vm6 = vcmask 441728   ;;  %vm45_vm7 = vcmask 392528   ;;  %vm51_vm8 = vcmask 343328   ;;  %vm57_vm9 = vcmask 294128  }
   0x9   :  { %vm63_vm10 = vcmask 244928   ;;  %vm69_vm11 = vcmask 195728   ;;  %vm75_vm12 = vcmask 146528   ;;  %vm81_vm13 = vcmask 97328  }
   0xa   :  { %31 = vrot.lane.b32.xlu0 %v93_v4, %s119_s24  ;;  %37 = vrot.lane.b32.xlu1 %v94_v5, %s120_s25 }
   0xe   :  { %43 = vrot.lane.b32.xlu0 %v95_v7, %s121_s30  ;;  %49 = vrot.lane.b32.xlu1 %v96_v8, %s122_s2 }
  0x12   :  { %55 = vrot.lane.b32.xlu0 %v97_v9, %s123_s7  ;;  %61 = vrot.lane.b32.xlu1 %v98_v10, %s124_s8 }
  0x16   :  { %67 = vrot.lane.b32.xlu0 %v99_v11, %s125_s13  ;;  %73 = vrot.lane.b32.xlu1 %v100_v12, %s126_s14 }
  0x1a   :  { %79 = vrot.lane.b32.xlu0 %v101_v13, %s127_s0 }
  0x74   :  { %v8_v14 = vpop.permute.xlu0 %7   ;;  %v20_v15 = vpop.permute.xlu1 %19  }
  0x75   :  { %10 = vst.msk [vmem:[#allocation0] sm:$0x1] %vm9_vm1, %v8_v14  }
  0x78   :  { %v14_v16 = vpop.permute.xlu0 %13   ;;  %v26_v17 = vpop.permute.xlu1 %25  }
  0x79   :  { %16 = vst.msk [vmem:[#allocation0] sm:$0x1] %vm15_vm2, %v14_v16  }
  0x7a   :  { %22 = vst.msk [vmem:[#allocation0] sm:$0x1] %vm21_vm3, %v20_v15  }
  0x7b   :  { %28 = vst.msk [vmem:[#allocation0] sm:$0x1] %vm27_vm4, %v26_v17  }
  0x7c   :  { %v32_v18 = vpop.permute.xlu0 %31   ;;  %v38_v19 = vpop.permute.xlu1 %37  }
  0x7d   :  { %34 = vst.msk [vmem:[#allocation0] sm:$0x1] %vm33_vm5, %v32_v18  }
  0x7e   :  { %40 = vst.msk [vmem:[#allocation0] sm:$0x1] %vm39_vm6, %v38_v19  }
  0x80   :  { %v44_v20 = vpop.permute.xlu0 %43   ;;  %v50_v21 = vpop.permute.xlu1 %49  }
  0x81   :  { %46 = vst.msk [vmem:[#allocation0] sm:$0x1] %vm45_vm7, %v44_v20  }
  0x82   :  { %52 = vst.msk [vmem:[#allocation0] sm:$0x1] %vm51_vm8, %v50_v21  }
  0x84   :  { %v56_v22 = vpop.permute.xlu0 %55   ;;  %v62_v23 = vpop.permute.xlu1 %61  }
  0x85   :  { %58 = vst.msk [vmem:[#allocation0] sm:$0x1] %vm57_vm9, %v56_v22  }
  0x86   :  { %64 = vst.msk [vmem:[#allocation0] sm:$0x1] %vm63_vm10, %v62_v23  }
  0x88   :  { %v68_v24 = vpop.permute.xlu0 %67   ;;  %v74_v25 = vpop.permute.xlu1 %73  }
  0x89   :  { %70 = vst.msk [vmem:[#allocation0] sm:$0x1] %vm69_vm11, %v68_v24  }
  0x8a   :  { %76 = vst.msk [vmem:[#allocation0] sm:$0x1] %vm75_vm12, %v74_v25  }
  0x8c   :  { %v80_v26 = vpop.permute.xlu0 %79  }
  0x8d   :  { %82 = vst.msk [vmem:[#allocation0] sm:$0x1] %vm81_vm13, %v80_v26  }
  0x94   :  { %v86_v27 = vld [vmem:[#allocation0] sm:$0x1] }
  0x95   :  { %88 = vst [vmem:[%s184_s1] sm:$0x1] %v86_v27 }

// kernel: tile.18
= control target key start
LH: loop header
LB: loop body
LE: loop exit
PB: predicated region body
PF: predicated region fallthrough
CT: control target
= control target key end

     0   :  { %s22_s0 = inlined_call_operand.vmem [shape: f32[16], index: 0, kind: input, shape index: {}]   ;;  %s23_s1 = inlined_call_operand.vmem [shape: f32[5,16], index: 1, kind: output, shape index: {}]  }
   0x1   :  { %v4_v0 = vld [vmem:[%s22_s0] ss:$0 sm:$0xff] }
   0x2   :  { %5 = vst [vmem:[%s23_s1] sm:$0xff] %v4_v0 }

// kernel: tile.19
= control target key start
LH: loop header
LB: loop body
LE: loop exit
PB: predicated region body
PF: predicated region fallthrough
CT: control target
= control target key end

     0   :  { %s43_s10 = smov 64   ;;  %s44_s11 = smov 32   ;;  %vm3_vm0 = vcmask 130048   ;;  %vm9_vm1 = vcmask 654848   ;;  %vm15_vm2 = vcmask 523648   ;;  %vm21_vm3 = vcmask 392448   ;;  %s75_s0 = inlined_call_operand.vmem [shape: f32[5,16], index: 0, kind: input, shape index: {}]   ;;  %s76_s1 = inlined_call_operand.vmem [shape: f32[80], index: 1, kind: output, shape index: {}]  }
   0x1   :  { %v35_v0 = vld [vmem:[%s75_s0 + $0x4] sm:$0x1]   ;;  %v37_v1 = vld [vmem:[%s75_s0 + $0x2] sm:$0x1]   ;;  %v36_v2 = vld [vmem:[%s75_s0 + $0x3] sm:$0x1]  }
   0x2   :  { %7 = vrot.lane.b32.xlu0 %v35_v0, %s43_s10  ;;  %19 = vrot.lane.b32.xlu1 %v37_v1, %s44_s11  ;;  %v38_v3 = vld [vmem:[%s75_s0 + $0x1] sm:$0x1]   ;;  %v2_v4 = vld [vmem:[%s75_s0] sm:$0x1]   ;;  %s45_s0 = smov 48   ;;  %s46_s18 = smov 16  }
   0x3   :  { %4 = vst.msk [vmem:[#allocation0] sm:$0x1] %vm3_vm0, %v2_v4   ;;  %vm27_vm4 = vcmask 261248  }
   0x6   :  { %13 = vrot.lane.b32.xlu0 %v36_v2, %s45_s0  ;;  %25 = vrot.lane.b32.xlu1 %v38_v3, %s46_s18 }
  0x74   :  { %v8_v5 = vpop.permute.xlu0 %7   ;;  %v20_v6 = vpop.permute.xlu1 %19  }
  0x75   :  { %10 = vst.msk [vmem:[#allocation0] sm:$0x1] %vm9_vm1, %v8_v5  }
  0x78   :  { %v14_v7 = vpop.permute.xlu0 %13   ;;  %v26_v8 = vpop.permute.xlu1 %25  }
  0x79   :  { %16 = vst.msk [vmem:[#allocation0] sm:$0x1] %vm15_vm2, %v14_v7  }
  0x7a   :  { %22 = vst.msk [vmem:[#allocation0] sm:$0x1] %vm21_vm3, %v20_v6  }
  0x7b   :  { %28 = vst.msk [vmem:[#allocation0] sm:$0x1] %vm27_vm4, %v26_v8  }
  0x82   :  { %v32_v9 = vld [vmem:[#allocation0] sm:$0x1] }
  0x83   :  { %34 = vst [vmem:[%s76_s1] sm:$0x1] %v32_v9 }

// kernel: lenet5_forward.1
= control target key start
LH: loop header
LB: loop body
LE: loop exit
PB: predicated region body
PF: predicated region fallthrough
CT: control target
= control target key end

     0   :  { %vm73_vm0 = vcmask 261120   ;;  %s2425_s27 = smov 64   ;;  %s2426_s28 = smov 96   ;;  %vm59_vm1 = vcmask 785408   ;;  %vm66_vm2 = vcmask 523264   ;;  %vm2430_vm3 = vmmov 0   ;;  %s4130_s0 = inlined_call_operand.vmem [shape: f32[8,1024], index: 0, kind: input, shape index: {}]   ;;  %s4131_s1 = inlined_call_operand.vmem [shape: f32[160,256], index: 1, kind: input, shape index: {}]   ;;  %s4132_s3 = inlined_call_operand.vmem [shape: f32[640,256], index: 3, kind: input, shape index: {}]   ;;  %s4133_s2 = inlined_call_operand.vmem [shape: f32[1,256], index: 2, kind: input, shape index: {}]   ;;  %s4134_s11 = inlined_call_operand.vmem [shape: f32[28,8,256], index: 11, kind: output, shape index: {0}]   ;;  %s4135_s12 = inlined_call_operand.vmem [shape: f32[14,8,128], index: 12, kind: output, shape index: {1}]   ;;  %s4136_s5 = inlined_call_operand.vmem [shape: f32[640,120], index: 5, kind: input, shape index: {}]   ;;  %s4137_s4 = inlined_call_operand.vmem [shape: f32[1,256], index: 4, kind: input, shape index: {}]   ;;  %s4138_s13 = inlined_call_operand.vmem [shape: f32[10,8,256], index: 13, kind: output, shape index: {2}]   ;;  %s4139_s14 = inlined_call_operand.vmem [shape: f32[5,8,128], index: 14, kind: output, shape index: {3}]   ;;  %s4140_s7 = inlined_call_operand.vmem [shape: f32[120,84], index: 7, kind: input, shape index: {}]   ;;  %s4141_s9 = inlined_call_operand.vmem [shape: f32[84,10], index: 9, kind: input, shape index: {}]   ;;  %s4142_s6 = inlined_call_operand.vmem [shape: f32[1,120], index: 6, kind: input, shape index: {}]   ;;  %s4143_s15 = inlined_call_operand.vmem [shape: f32[8,120], index: 15, kind: output, shape index: {4}]   ;;  %s4144_s8 = inlined_call_operand.vmem [shape: f32[1,84], index: 8, kind: input, shape index: {}]   ;;  %s4145_s16 = inlined_call_operand.vmem [shape: f32[8,84], index: 16, kind: output, shape index: {5}]   ;;  %s4146_s10 = inlined_call_operand.vmem [shape: f32[1,10], index: 10, kind: input, shape index: {}]   ;;  %s4147_s17 = inlined_call_operand.vmem [shape: f32[8,10], index: 17, kind: output, shape index: {6}]  }
   0x1   :  { %4150 = sst [smem:[#allocation2_spill]] %s4130_s0  ;;  %vm1568_vm4 = vcmask 982016   ;;  %vm1689_vm5 = vcmask 1043456   ;;  %vm1666_vm6 = vcmask 687104   ;;  %vm1763_vm7 = vcmask 80896  }
   0x2   :  { %4151 = sst [smem:[#allocation3_spill]] %s4131_s1  ;;  %s4152_s26 = sld [smem:[#allocation2_spill]] }
   0x3   :  { %s4153_s19 = sld [smem:[#allocation3_spill]]  ;;  %s2427_s1 = smov 32  }
   0x8   :  { %v2524_v0 = vld [vmem:[%s4152_s26] sm:$0xff]  ;;  %v2533_v1 = vld [vmem:[%s4152_s26 + $0x8] sm:$0xff]  ;;  %v2590_v21 = vld [vmem:[%s4152_s26 + $0x10] sm:$0xff] }
   0x9   :  { %62 = vrot.lane.b32.xlu1 %v2524_v0, %s2425_s27  ;;  %55 = vrot.lane.b32.xlu0 %v2524_v0, %s2426_s28  ;;  %v155_v2 = vld [vmem:[%s4153_s19 + $0x8] sm:$0xff]  ;;  %v157_v3 = vld [vmem:[%s4153_s19 + $0x18] sm:$0xff] }
   0xa   :  { %1793 = vmatprep.mubr.msk.f32.mxu0 %vm73_vm0, %v2533_v1  ;;  %v154_v4 = vld [vmem:[%s4153_s19] sm:$0xff]  ;;  %v156_v5 = vld [vmem:[%s4153_s19 + $0x10] sm:$0xff]  ;;  %v2035_v6 = vpack.c.bf16 %v157_v3, %v155_v2  ;;  %v159_v8 = vld [vmem:[%s4153_s19 + $0x28] sm:$0xff] }
   0xb   :  { %v2037_v7 = vpack.c.bf16 %v156_v5, %v154_v4  ;;  %v161_v9 = vld [vmem:[%s4153_s19 + $0x38] sm:$0xff]  ;;  %v158_v10 = vld [vmem:[%s4153_s19 + $0x20] sm:$0xff]  ;;  %v160_v12 = vld [vmem:[%s4153_s19 + $0x30] sm:$0xff] }
   0xc   :  { %v2039_v11 = vpack.c.bf16 %v161_v9, %v159_v8  ;;  %v163_v13 = vld [vmem:[%s4153_s19 + $0x48] sm:$0xff]  ;;  %2036 = vmatprep.subr.bf16.mxu0 %v2035_v6  ;;  %v165_v14 = vld [vmem:[%s4153_s19 + $0x58] sm:$0xff]  ;;  %v2041_v15 = vpack.c.bf16 %v160_v12, %v158_v10  ;;  %v162_v17 = vld [vmem:[%s4153_s19 + $0x40] sm:$0xff] }
   0xd   :  { %64 = vrot.lane.b32.xlu1 %v2533_v1, %s2425_s27  ;;  %57 = vrot.lane.b32.xlu0 %v2533_v1, %s2426_s28  ;;  %v2043_v16 = vpack.c.bf16 %v165_v14, %v163_v13  ;;  %v164_v18 = vld [vmem:[%s4153_s19 + $0x50] sm:$0xff]  ;;  %v167_v19 = vld [vmem:[%s4153_s19 + $0x68] sm:$0xff] }
   0xe   :  { %2038 = vmatpush1.bf16.msra.mxu0 %v2037_v7  ;;  %v169_v20 = vld [vmem:[%s4153_s19 + $0x78] sm:$0xff]  ;;  %v2045_v22 = vpack.c.bf16 %v164_v18, %v162_v17  ;;  %v166_v24 = vld [vmem:[%s4153_s19 + $0x60] sm:$0xff]  ;;  %v168_v25 = vld [vmem:[%s4153_s19 + $0x70] sm:$0xff] }
   0xf   :  { %2040 = vmatprep.subr.bf16.mxu0 %v2039_v11  ;;  %v2047_v23 = vpack.c.bf16 %v169_v20, %v167_v19  ;;  %v171_v26 = vld [vmem:[%s4153_s19 + $0x88] sm:$0xff]  ;;  %v173_v27 = vld [vmem:[%s4153_s19 + $0x98] sm:$0xff]  ;;  %v2049_v29 = vpack.c.bf16 %v168_v25, %v166_v24  ;;  %v170_v31 = vld [vmem:[%s4153_s19 + $0x80] sm:$0xff] }
  0x10   :  { %v2611_v28 = vld [vmem:[%s4152_s26 + $0x18] sm:$0xff]  ;;  %v2051_v30 = vpack.c.bf16 %v173_v27, %v171_v26  ;;  %v172_v32 = vld [vmem:[%s4153_s19 + $0x90] sm:$0xff]  ;;  %v175_v33 = vld [vmem:[%s4153_s19 + $0xa8] sm:$0xff] }
  0x11   :  { %71 = vrot.lane.b32.xlu1 %v2533_v1, %s2427_s1  ;;  %69 = vrot.lane.b32.xlu0 %v2524_v0, %s2427_s1  ;;  %v177_v34 = vld [vmem:[%s4153_s19 + $0xb8] sm:$0xff]  ;;  %v2053_v35 = vpack.c.bf16 %v172_v32, %v170_v31  ;;  %v174_v37 = vld [vmem:[%s4153_s19 + $0xa0] sm:$0xff] }
  0x12   :  { %2042 = vmatpush1.bf16.msra.mxu0 %v2041_v15  ;;  %v2055_v36 = vpack.c.bf16 %v177_v34, %v175_v33  ;;  %v176_v38 = vld [vmem:[%s4153_s19 + $0xb0] sm:$0xff]  ;;  %v179_v39 = vld [vmem:[%s4153_s19 + $0xc8] sm:$0xff]  ;;  %v181_v40 = vld [vmem:[%s4153_s19 + $0xd8] sm:$0xff] }
  0x13   :  { %2044 = vmatprep.subr.bf16.mxu0 %v2043_v16  ;;  %v2648_v41 = vld [vmem:[%s4152_s26 + $0x20] sm:$0xff]  ;;  %v2057_v42 = vpack.c.bf16 %v176_v38, %v174_v37  ;;  %v2059_v43 = vpack.c.bf16 %v181_v40, %v179_v39  ;;  %v180_v45 = vld [vmem:[%s4153_s19 + $0xd0] sm:$0xff]  ;;  %v183_v46 = vld [vmem:[%s4153_s19 + $0xe8] sm:$0xff] }
  0x14   :  { %v178_v44 = vld [vmem:[%s4153_s19 + $0xc0] sm:$0xff]  ;;  %v185_v47 = vld [vmem:[%s4153_s19 + $0xf8] sm:$0xff]  ;;  %v2669_v48 = vld [vmem:[%s4152_s26 + $0x28] sm:$0xff] }
  0x15   :  { %81 = vrot.lane.b32.xlu1 %v2590_v21, %s2425_s27  ;;  %77 = vrot.lane.b32.xlu0 %v2590_v21, %s2426_s28  ;;  %v2061_v49 = vpack.c.bf16 %v180_v45, %v178_v44  ;;  %v2063_v50 = vpack.c.bf16 %v185_v47, %v183_v46  ;;  %v182_v51 = vld [vmem:[%s4153_s19 + $0xe0] sm:$0xff]  ;;  %v184_v52 = vld [vmem:[%s4153_s19 + $0xf0] sm:$0xff] }
  0x16   :  { %2046 = vmatpush1.bf16.msra.mxu0 %v2045_v22  ;;  %v187_v53 = vld [vmem:[%s4153_s19 + $0x108] sm:$0xff]  ;;  %v189_v54 = vld [vmem:[%s4153_s19 + $0x118] sm:$0xff]  ;;  %v2065_v55 = vpack.c.bf16 %v184_v52, %v182_v51  ;;  %v186_v57 = vld [vmem:[%s4153_s19 + $0x100] sm:$0xff] }
  0x17   :  { %2048 = vmatprep.subr.bf16.mxu0 %v2047_v23  ;;  %v2067_v56 = vpack.c.bf16 %v189_v54, %v187_v53  ;;  %v188_v58 = vld [vmem:[%s4153_s19 + $0x110] sm:$0xff]  ;;  %v191_v59 = vld [vmem:[%s4153_s19 + $0x128] sm:$0xff]  ;;  %v193_v60 = vld [vmem:[%s4153_s19 + $0x138] sm:$0xff] }
  0x18   :  { %v2706_v61 = vld [vmem:[%s4152_s26 + $0x30] sm:$0xff]  ;;  %v2069_v62 = vpack.c.bf16 %v188_v58, %v186_v57  ;;  %v2071_v63 = vpack.c.bf16 %v193_v60, %v191_v59  ;;  %v190_v2 = vld [vmem:[%s4153_s19 + $0x120] sm:$0xff]  ;;  %v2721_v4 = vld [vmem:[%s4152_s26 + $0x38] sm:$0xff] }
  0x19   :  { %85 = vrot.lane.b32.xlu0 %v2590_v21, %s2427_s1  ;;  %90 = vrot.lane.b32.xlu1 %v2611_v28, %s2426_s28  ;;  %v192_v3 = vld [vmem:[%s4153_s19 + $0x130] sm:$0xff]  ;;  %v664_v6 = vld [vmem:[%s4132_s3 + $0x8] sm:$0xff] }
  0x1a   :  { %2050 = vmatpush1.bf16.msra.mxu0 %v2049_v29  ;;  %v2073_v5 = vpack.c.bf16 %v192_v3, %v190_v2  ;;  %v666_v7 = vld [vmem:[%s4132_s3 + $0x18] sm:$0xff]  ;;  %v663_v8 = vld [vmem:[%s4132_s3] sm:$0xff]  ;;  %v665_v10 = vld [vmem:[%s4132_s3 + $0x10] sm:$0xff] }
  0x1b   :  { %2052 = vmatprep.subr.bf16.mxu0 %v2051_v30  ;;  %v2075_v9 = vpack.c.bf16 %v666_v7, %v664_v6  ;;  %v670_v11 = vld [vmem:[%s4132_s3 + $0x38] sm:$0xff]  ;;  %v2077_v12 = vpack.c.bf16 %v665_v10, %v663_v8  ;;  %v667_v14 = vld [vmem:[%s4132_s3 + $0x20] sm:$0xff]  ;;  %v669_v15 = vld [vmem:[%s4132_s3 + $0x30] sm:$0xff] }
  0x1c   :  { %v672_v16 = vld [vmem:[%s4132_s3 + $0x48] sm:$0xff]  ;;  %v674_v17 = vld [vmem:[%s4132_s3 + $0x58] sm:$0xff]  ;;  %v2081_v18 = vpack.c.bf16 %v669_v15, %v667_v14  ;;  %v671_v20 = vld [vmem:[%s4132_s3 + $0x40] sm:$0xff] }
  0x1d   :  { %94 = vrot.lane.b32.xlu0 %v2611_v28, %s2425_s27  ;;  %98 = vrot.lane.b32.xlu1 %v2611_v28, %s2427_s1  ;;  %v2083_v19 = vpack.c.bf16 %v674_v17, %v672_v16  ;;  %v673_v22 = vld [vmem:[%s4132_s3 + $0x50] sm:$0xff]  ;;  %v676_v23 = vld [vmem:[%s4132_s3 + $0x68] sm:$0xff] }
  0x1e   :  { %2054 = vmatpush1.bf16.msra.mxu0 %v2053_v35  ;;  %2076 = vmatprep.subr.bf16.mxu1 %v2075_v9  ;;  %v678_v24 = vld [vmem:[%s4132_s3 + $0x78] sm:$0xff]  ;;  %v2085_v25 = vpack.c.bf16 %v673_v22, %v671_v20  ;;  %v675_v27 = vld [vmem:[%s4132_s3 + $0x60] sm:$0xff]  ;;  %v677_v29 = vld [vmem:[%s4132_s3 + $0x70] sm:$0xff] }
  0x1f   :  { %2056 = vmatprep.subr.bf16.mxu0 %v2055_v36  ;;  %2078 = vmatpush1.bf16.msra.mxu1 %v2077_v12  ;;  %v2087_v26 = vpack.c.bf16 %v678_v24, %v676_v23  ;;  %v680_v30 = vld [vmem:[%s4132_s3 + $0x88] sm:$0xff]  ;;  %v682_v31 = vld [vmem:[%s4132_s3 + $0x98] sm:$0xff]  ;;  %v2089_v32 = vpack.c.bf16 %v677_v29, %v675_v27  ;;  %v679_v34 = vld [vmem:[%s4132_s3 + $0x80] sm:$0xff] }
  0x20   :  { %v2091_v33 = vpack.c.bf16 %v682_v31, %v680_v30  ;;  %v681_v35 = vld [vmem:[%s4132_s3 + $0x90] sm:$0xff]  ;;  %v684_v36 = vld [vmem:[%s4132_s3 + $0xa8] sm:$0xff]  ;;  %v686_v37 = vld [vmem:[%s4132_s3 + $0xb8] sm:$0xff] }
  0x21   :  { %103 = vrot.lane.b32.xlu0 %v2648_v41, %s2426_s28  ;;  %107 = vrot.lane.b32.xlu1 %v2648_v41, %s2425_s27  ;;  %v2093_v38 = vpack.c.bf16 %v681_v35, %v679_v34  ;;  %v685_v44 = vld [vmem:[%s4132_s3 + $0xb0] sm:$0xff]  ;;  %v688_v45 = vld [vmem:[%s4132_s3 + $0xc8] sm:$0xff] }
  0x22   :  { %2058 = vmatpush1.bf16.msra.mxu0 %v2057_v42  ;;  %v2095_v42 = vpack.c.bf16 %v686_v37, %v684_v36  ;;  %v690_v46 = vld [vmem:[%s4132_s3 + $0xd8] sm:$0xff]  ;;  %v687_v52 = vld [vmem:[%s4132_s3 + $0xc0] sm:$0xff]  ;;  %v689_v53 = vld [vmem:[%s4132_s3 + $0xd0] sm:$0xff] }
  0x23   :  { %2060 = vmatprep.subr.bf16.mxu0 %v2059_v43  ;;  %v683_v43 = vld [vmem:[%s4132_s3 + $0xa0] sm:$0xff]  ;;  %v2099_v51 = vpack.c.bf16 %v690_v46, %v688_v45  ;;  %v2101_v57 = vpack.c.bf16 %v689_v53, %v687_v52  ;;  %v693_v60 = vld [vmem:[%s4132_s3 + $0xf0] sm:$0xff]  ;;  %v698_v2 = vld [vmem:[%s4132_s3 + $0x118] sm:$0xff] }
  0x24   :  { %v2097_v47 = vpack.c.bf16 %v685_v44, %v683_v43  ;;  %v691_v59 = vld [vmem:[%s4132_s3 + $0xe0] sm:$0xff]  ;;  %v697_v10 = vld [vmem:[%s4132_s3 + $0x110] sm:$0xff]  ;;  %v708_v24 = vld [vmem:[%s4132_s3 + $0x168] sm:$0xff] }
  0x25   :  { %111 = vrot.lane.b32.xlu0 %v2648_v41, %s2427_s1  ;;  %116 = vrot.lane.b32.xlu1 %v2669_v48, %s2426_s28  ;;  %v2105_v7 = vpack.c.bf16 %v693_v60, %v691_v59  ;;  %v695_v9 = vld [vmem:[%s4132_s3 + $0x100] sm:$0xff]  ;;  %v701_v15 = vld [vmem:[%s4132_s3 + $0x130] sm:$0xff] }
  0x26   :  { %2062 = vmatpush1.bf16.msra.mxu0 %v2061_v49  ;;  %v2109_v12 = vpack.c.bf16 %v697_v10, %v695_v9  ;;  %v699_v14 = vld [vmem:[%s4132_s3 + $0x120] sm:$0xff]  ;;  %v720_v10 = vld [vmem:[%s4132_s3 + $0x1c8] sm:$0xff] }
  0x27   :  { %2064 = vmatprep.subr.bf16.mxu0 %v2063_v50  ;;  %v2113_v17 = vpack.c.bf16 %v701_v15, %v699_v14  ;;  %v703_v22 = vld [vmem:[%s4132_s3 + $0x140] sm:$0xff] }
  0x28   :  { %v707_v53 = vld [vmem:[%s4132_s3 + $0x160] sm:$0xff] }
  0x29   :  { %120 = vrot.lane.b32.xlu0 %v2669_v48, %s2425_s27  ;;  %124 = vrot.lane.b32.xlu1 %v2669_v48, %s2427_s1  ;;  %v711_v60 = vld [vmem:[%s4132_s3 + $0x180] sm:$0xff] }
  0x2a   :  { %2066 = vmatpush1.bf16.msra.mxu0 %v2065_v55  ;;  %v692_v55 = vld [vmem:[%s4132_s3 + $0xe8] sm:$0xff] }
  0x2b   :  { %2068 = vmatprep.subr.bf16.mxu0 %v2067_v56  ;;  %v694_v56 = vld [vmem:[%s4132_s3 + $0xf8] sm:$0xff] }
  0x2c   :  { %v2103_v58 = vpack.c.bf16 %v694_v56, %v692_v55 }
  0x2d   :  { %129 = vrot.lane.b32.xlu0 %v2706_v61, %s2426_s28  ;;  %133 = vrot.lane.b32.xlu1 %v2706_v61, %s2425_s27 }
  0x2e   :  { %2070 = vmatpush1.bf16.msra.mxu0 %v2069_v62 }
  0x2f   :  { %2072 = vmatprep.subr.bf16.mxu0 %v2071_v63  ;;  %v696_v63 = vld [vmem:[%s4132_s3 + $0x108] sm:$0xff] }
  0x30   :  { %v2107_v8 = vpack.c.bf16 %v698_v2, %v696_v63 }
  0x31   :  { %137 = vrot.lane.b32.xlu0 %v2706_v61, %s2427_s1  ;;  %142 = vrot.lane.b32.xlu1 %v2721_v4, %s2426_s28 }
  0x32   :  { %2074 = vmatpush1.bf16.msra.mxu0 %v2073_v5 }
  0x35   :  { %146 = vrot.lane.b32.xlu0 %v2721_v4, %s2425_s27  ;;  %150 = vrot.lane.b32.xlu1 %v2721_v4, %s2427_s1 }
  0x36   :  { %327 = vmatmul.mubr.f32.vlgmr.msra.gmra.mrb[0].mxu0 %v2524_v0  ;;  %v668_v0 = vld [vmem:[%s4132_s3 + $0x28] sm:$0xff] }
  0x37   :  { %v2079_v13 = vpack.c.bf16 %v670_v11, %v668_v0  ;;  %v700_v0 = vld [vmem:[%s4132_s3 + $0x128] sm:$0xff]  ;;  %v702_v11 = vld [vmem:[%s4132_s3 + $0x138] sm:$0xff] }
  0x39   :  { %2080 = vmatprep.subr.bf16.mxu1 %v2079_v13  ;;  %v2111_v13 = vpack.c.bf16 %v702_v11, %v700_v0  ;;  %v722_v0 = vld [vmem:[%s4132_s3 + $0x1d8] sm:$0xff] }
  0x3a   :  { %2082 = vmatpush1.bf16.msra.mxu1 %v2081_v18  ;;  %v704_v18 = vld [vmem:[%s4132_s3 + $0x148] sm:$0xff] }
  0x3b   :  { %2084 = vmatprep.subr.bf16.mxu1 %v2083_v19  ;;  %v706_v19 = vld [vmem:[%s4132_s3 + $0x158] sm:$0xff] }
  0x3c   :  { %v2115_v20 = vpack.c.bf16 %v706_v19, %v704_v18  ;;  %v723_v19 = vld [vmem:[%s4132_s3 + $0x1e0] sm:$0xff] }
  0x3e   :  { %2086 = vmatpush1.bf16.msra.mxu1 %v2085_v25  ;;  %v710_v25 = vld [vmem:[%s4132_s3 + $0x178] sm:$0xff] }
  0x3f   :  { %2088 = vmatprep.subr.bf16.mxu1 %v2087_v26  ;;  %v2119_v29 = vpack.c.bf16 %v710_v25, %v708_v24  ;;  %v728_v25 = vld [vmem:[%s4132_s3 + $0x208] sm:$0xff] }
  0x42   :  { %2090 = vmatpush1.bf16.msra.mxu1 %v2089_v32 }
  0x43   :  { %2092 = vmatprep.subr.bf16.mxu1 %v2091_v33 }
  0x46   :  { %2094 = vmatpush1.bf16.msra.mxu1 %v2093_v38 }
  0x47   :  { %2096 = vmatprep.subr.bf16.mxu1 %v2095_v42 }
  0x4a   :  { %2098 = vmatpush1.bf16.msra.mxu1 %v2097_v47 }
  0x4b   :  { %2100 = vmatprep.subr.bf16.mxu1 %v2099_v51 }
  0x4e   :  { %2102 = vmatpush1.bf16.msra.mxu1 %v2101_v57  ;;  %v714_v57 = vld [vmem:[%s4132_s3 + $0x198] sm:$0xff] }
  0x4f   :  { %2104 = vmatprep.subr.bf16.mxu1 %v2103_v58 }
  0x52   :  { %2106 = vmatpush1.bf16.msra.mxu1 %v2105_v7  ;;  %v715_v7 = vld [vmem:[%s4132_s3 + $0x1a0] sm:$0xff] }
  0x53   :  { %2108 = vmatprep.subr.bf16.mxu1 %v2107_v8  ;;  %v717_v8 = vld [vmem:[%s4132_s3 + $0x1b0] sm:$0xff] }
  0x54   :  { %v2129_v9 = vpack.c.bf16 %v717_v8, %v715_v7 }
  0x56   :  { %2110 = vmatpush1.bf16.msra.mxu1 %v2109_v12  ;;  %v2131_v12 = vpack.c.bf16 %v722_v0, %v720_v10  ;;  %v734_v10 = vld [vmem:[%s4132_s3 + $0x238] sm:$0xff] }
  0x57   :  { %2112 = vmatprep.subr.bf16.mxu1 %v2111_v13  ;;  %v719_v13 = vld [vmem:[%s4132_s3 + $0x1c0] sm:$0xff] }
  0x5a   :  { %2114 = vmatpush1.bf16.msra.mxu1 %v2113_v17  ;;  %v726_v17 = vld [vmem:[%s4132_s3 + $0x1f8] sm:$0xff] }
  0x5b   :  { %2116 = vmatprep.subr.bf16.mxu1 %v2115_v20  ;;  %v725_v20 = vld [vmem:[%s4132_s3 + $0x1f0] sm:$0xff] }
  0x7b   :  { %v63_v39 = vpop.permute.xlu1 %62  ;;  %v56_v40 = vpop.permute.xlu0 %55 }
  0x7f   :  { %v2810_v49 = vpop.permute.xlu1 %64  ;;  %v58_v50 = vpop.permute.xlu0 %57 }
  0x80   :  { %1794 = vmatprep.mubr.msk.f32.mxu0 %vm73_vm0, %v58_v50  ;;  %v60_v54 = vsel %vm59_vm1, %v56_v40, %v58_v50  ;;  %v67_v62 = vsel %vm66_vm2, %v63_v39, %v2810_v49 }
  0x81   :  { %333 = vmatmul.mubr.f32.gmra.mrb[2].mxu0 %v60_v54  ;;  %v709_v54 = vld [vmem:[%s4132_s3 + $0x170] sm:$0xff] }
  0x82   :  { %1795 = vmatprep.mubr.msk.f32.mxu0 %vm73_vm0, %v2810_v49  ;;  %v2121_v55 = vpack.c.bf16 %v709_v54, %v707_v53 }
  0x83   :  { %v72_v3 = vpop.permute.xlu1 %71  ;;  %v70_v5 = vpop.permute.xlu0 %69 }
  0x84   :  { %v74_v6 = vsel %vm73_vm0, %v70_v5, %v72_v3  ;;  %v718_v5 = vld [vmem:[%s4132_s3 + $0x1b8] sm:$0xff] }
  0x85   :  { %339 = vmatmul.mubr.f32.gmra.mrb[4].mxu0 %v67_v62  ;;  %v713_v62 = vld [vmem:[%s4132_s3 + $0x190] sm:$0xff] }
  0x86   :  { %1796 = vmatprep.mubr.msk.f32.mxu0 %vm73_vm0, %v72_v3  ;;  %v2125_v63 = vpack.c.bf16 %v713_v62, %v711_v60 }
  0x87   :  { %v78_v16 = vpop.permute.xlu0 %77  ;;  %v82_v26 = vpop.permute.xlu1 %81 }
  0x88   :  { %v79_v23 = vsel %vm59_vm1, %v58_v50, %v78_v16  ;;  %v83_v30 = vsel %vm66_vm2, %v2810_v49, %v82_v26 }
  0x89   :  { %345 = vmatmul.mubr.f32.gmra.mrb[6].mxu0 %v74_v6 }
  0x8a   :  { %1797 = vmatprep.mubr.msk.f32.mxu0 %vm73_vm0, %v2590_v21 }
  0x8b   :  { %v86_v31 = vpop.permute.xlu0 %85  ;;  %v91_v33 = vpop.permute.xlu1 %90 }
  0x8c   :  { %v87_v32 = vsel %vm73_vm0, %v72_v3, %v86_v31  ;;  %v92_v34 = vsel %vm59_vm1, %v78_v16, %v91_v33  ;;  %v716_v3 = vld [vmem:[%s4132_s3 + $0x1a8] sm:$0xff] }
  0x8d   :  { %351 = vmatmul.mubr.f32.gmra.mrb[8].mxu0 %v2533_v1  ;;  %v705_v1 = vld [vmem:[%s4132_s3 + $0x150] sm:$0xff]  ;;  %v2127_v6 = vpack.c.bf16 %v718_v5, %v716_v3  ;;  %v727_v5 = vld [vmem:[%s4132_s3 + $0x200] sm:$0xff] }
  0x8e   :  { %1798 = vmatprep.mubr.msk.f32.mxu0 %vm73_vm0, %v78_v16  ;;  %v2117_v27 = vpack.c.bf16 %v705_v1, %v703_v22  ;;  %v2137_v1 = vpack.c.bf16 %v725_v20, %v723_v19  ;;  %v736_v20 = vld [vmem:[%s4132_s3 + $0x248] sm:$0xff] }
  0x8f   :  { %v95_v35 = vpop.permute.xlu0 %94  ;;  %v99_v37 = vpop.permute.xlu1 %98 }
  0x90   :  { %2118 = vmatpush1.bf16.msra.mxu1 %v2117_v27  ;;  %v96_v36 = vsel %vm66_vm2, %v82_v26, %v95_v35  ;;  %v100_v38 = vsel %vm73_vm0, %v86_v31, %v99_v37 }
  0x91   :  { %357 = vmatmul.mubr.f32.gmra.mrb[10].mxu0 %v79_v23  ;;  %2120 = vmatprep.subr.bf16.mxu1 %v2119_v29  ;;  %v196_v29 = vlaneseq }
  0x92   :  { %1799 = vmatprep.mubr.msk.f32.mxu0 %vm73_vm0, %v82_v26  ;;  %v730_v26 = vld [vmem:[%s4132_s3 + $0x218] sm:$0xff] }
  0x93   :  { %v108_v40 = vpop.permute.xlu1 %107  ;;  %v2139_v27 = vpack.c.bf16 %v730_v26, %v728_v25 }
  0x94   :  { %v109_v42 = vsel %vm66_vm2, %v95_v35, %v108_v40  ;;  %2122 = vmatpush1.bf16.msra.mxu1 %v2121_v55 }
  0x95   :  { %363 = vmatmul.mubr.f32.gmra.mrb[12].mxu0 %v83_v30  ;;  %v2995_v30 = vshrl.u32 %v196_v29, 7 }
  0x96   :  { %1800 = vmatprep.mubr.msk.f32.mxu0 %vm73_vm0, %v86_v31 }
  0x97   :  { %v198_v31 = vsub.s32 0, %v2995_v30 }
  0x99   :  { %369 = vmatmul.mubr.f32.gmra.mrb[14].mxu0 %v87_v32  ;;  %v194_v32 = vld [vmem:[%s4133_s2] sm:$0x3] }
  0x9a   :  { %1801 = vmatprep.mubr.msk.f32.mxu0 %vm73_vm0, %v2611_v28 }
  0x9d   :  { %375 = vmatmul.mubr.f32.gmra.mrb[16].mxu0 %v2590_v21  ;;  %v104_v21 = vpop.permute.xlu0 %103 }
  0x9e   :  { %1802 = vmatprep.mubr.msk.f32.mxu0 %vm73_vm0, %v91_v33  ;;  %v105_v39 = vsel %vm59_vm1, %v91_v33, %v104_v21  ;;  %v202_v33 = vsub.s32 1, %v2995_v30 }
  0xa1   :  { %381 = vmatmul.mubr.f32.gmra.mrb[18].mxu0 %v92_v34  ;;  %v112_v43 = vpop.permute.xlu0 %111  ;;  %v3004_v34 = vrot.slane %v194_v32, %v198_v31 }
  0xa2   :  { %1803 = vmatprep.mubr.msk.f32.mxu0 %vm73_vm0, %v95_v35  ;;  %v113_v44 = vsel %vm73_vm0, %v99_v37, %v112_v43  ;;  %v3008_v35 = vrot.slane %v194_v32, %v202_v33  ;;  %v735_v32 = vld [vmem:[%s4132_s3 + $0x240] sm:$0xff] }
  0xa5   :  { %387 = vmatmul.mubr.f32.gmra.mrb[20].mxu0 %v96_v36  ;;  %v121_v46 = vpop.permute.xlu0 %120 }
  0xa6   :  { %1804 = vmatprep.mubr.msk.f32.mxu0 %vm73_vm0, %v99_v37  ;;  %v122_v47 = vsel %vm66_vm2, %v108_v40, %v121_v46 }
  0xa9   :  { %393 = vmatmul.mubr.f32.gmra.mrb[22].mxu0 %v100_v38 }
  0xaa   :  { %1805 = vmatprep.mubr.msk.f32.mxu0 %vm73_vm0, %v2648_v41 }
  0xad   :  { %399 = vmatmul.mubr.f32.gmra.mrb[24].mxu0 %v2611_v28  ;;  %v117_v28 = vpop.permute.xlu1 %116 }
  0xae   :  { %1806 = vmatprep.mubr.msk.f32.mxu0 %vm73_vm0, %v104_v21  ;;  %v118_v45 = vsel %vm59_vm1, %v104_v21, %v117_v28 }
  0xb1   :  { %405 = vmatmul.mubr.f32.gmra.mrb[26].mxu0 %v105_v39  ;;  %v125_v49 = vpop.permute.xlu1 %124 }
  0xb2   :  { %1807 = vmatprep.mubr.msk.f32.mxu0 %vm73_vm0, %v108_v40  ;;  %v126_v50 = vsel %vm73_vm0, %v112_v43, %v125_v49 }
  0xb5   :  { %411 = vmatmul.mubr.f32.gmra.mrb[28].mxu0 %v109_v42  ;;  %v134_v52 = vpop.permute.xlu1 %133 }
  0xb6   :  { %1808 = vmatprep.mubr.msk.f32.mxu0 %vm73_vm0, %v112_v43  ;;  %v135_v56 = vsel %vm66_vm2, %v121_v46, %v134_v52 }
  0xb9   :  { %417 = vmatmul.mubr.f32.gmra.mrb[30].mxu0 %v113_v44  ;;  %v143_v11 = vpop.permute.xlu1 %142 }
  0xba   :  { %1809 = vmatprep.mubr.msk.f32.mxu0 %vm73_vm0, %v2669_v48 }
  0xbd   :  { %423 = vmatmul.mubr.f32.gmra.mrb[32].mxu0 %v2648_v41  ;;  %v130_v41 = vpop.permute.xlu0 %129  ;;  %v151_v23 = vpop.permute.xlu1 %150 }
  0xbe   :  { %1810 = vmatprep.mubr.msk.f32.mxu0 %vm73_vm0, %v117_v28  ;;  %v131_v51 = vsel %vm59_vm1, %v117_v28, %v130_v41  ;;  %v144_v16 = vsel %vm59_vm1, %v130_v41, %v143_v11 }
  0xc1   :  { %429 = vmatmul.mubr.f32.gmra.mrb[34].mxu0 %v118_v45  ;;  %v138_v58 = vpop.permute.xlu0 %137 }
  0xc2   :  { %1811 = vmatprep.mubr.msk.f32.mxu0 %vm73_vm0, %v121_v46  ;;  %v139_v2 = vsel %vm73_vm0, %v125_v49, %v138_v58  ;;  %v152_v24 = vsel %vm73_vm0, %v138_v58, %v151_v23 }
  0xc5   :  { %435 = vmatmul.mubr.f32.gmra.mrb[36].mxu0 %v122_v47  ;;  %v147_v15 = vpop.permute.xlu0 %146 }
  0xc6   :  { %1812 = vmatprep.mubr.msk.f32.mxu0 %vm73_vm0, %v125_v49  ;;  %v148_v22 = vsel %vm66_vm2, %v134_v52, %v147_v15 }
  0xc9   :  { %441 = vmatmul.mubr.f32.gmra.mrb[38].mxu0 %v126_v50 }
  0xca   :  { %1813 = vmatprep.mubr.msk.f32.mxu0 %vm73_vm0, %v2706_v61 }
  0xcd   :  { %447 = vmatmul.mubr.f32.gmra.mrb[40].mxu0 %v2669_v48  ;;  %v712_v48 = vld [vmem:[%s4132_s3 + $0x188] sm:$0xff] }
  0xce   :  { %1814 = vmatprep.mubr.msk.f32.mxu0 %vm73_vm0, %v130_v41  ;;  %v2123_v59 = vpack.c.bf16 %v714_v57, %v712_v48 }
  0xd0   :  { %2124 = vmatprep.subr.bf16.mxu1 %v2123_v59 }
  0xd1   :  { %453 = vmatmul.mubr.f32.gmra.mrb[42].mxu0 %v131_v51  ;;  %2126 = vmatpush1.bf16.msra.mxu1 %v2125_v63 }
  0xd2   :  { %1815 = vmatprep.mubr.msk.f32.mxu0 %vm73_vm0, %v134_v52  ;;  %2128 = vmatprep.subr.bf16.mxu1 %v2127_v6  ;;  %v729_v6 = vld [vmem:[%s4132_s3 + $0x210] sm:$0xff] }
  0xd5   :  { %459 = vmatmul.mubr.f32.gmra.mrb[44].mxu0 %v135_v56  ;;  %2130 = vmatpush1.bf16.msra.mxu1 %v2129_v9  ;;  %v732_v9 = vld [vmem:[%s4132_s3 + $0x228] sm:$0xff] }
  0xd6   :  { %1816 = vmatprep.mubr.msk.f32.mxu0 %vm73_vm0, %v138_v58  ;;  %2132 = vmatprep.subr.bf16.mxu1 %v2131_v12 }
  0xd9   :  { %465 = vmatmul.mubr.f32.gmra.mrb[46].mxu0 %v139_v2 }
  0xda   :  { %1817 = vmatprep.mubr.msk.f32.mxu0 %vm73_vm0, %v2721_v4  ;;  %v721_v4 = vld [vmem:[%s4132_s3 + $0x1d0] sm:$0xff] }
  0xdb   :  { %v2133_v14 = vpack.c.bf16 %v721_v4, %v719_v13  ;;  %v2141_v4 = vpack.c.bf16 %v729_v6, %v727_v5  ;;  %v750_v5 = vld [vmem:[%s4132_s3 + $0x2b8] sm:$0xff] }
  0xdd   :  { %471 = vmatmul.mubr.f32.gmra.mrb[48].mxu0 %v2706_v61  ;;  %2134 = vmatpush1.bf16.msra.mxu1 %v2133_v14  ;;  %v724_v61 = vld [vmem:[%s4132_s3 + $0x1e8] sm:$0xff] }
  0xde   :  { %1818 = vmatprep.mubr.msk.f32.mxu0 %vm73_vm0, %v143_v11  ;;  %v2135_v18 = vpack.c.bf16 %v726_v17, %v724_v61  ;;  %v731_v61 = vld [vmem:[%s4132_s3 + $0x220] sm:$0xff]  ;;  %v733_v17 = vld [vmem:[%s4132_s3 + $0x230] sm:$0xff] }
  0xdf   :  { %v2145_v25 = vpack.c.bf16 %v733_v17, %v731_v61  ;;  %v754_v61 = vld [vmem:[%s4132_s3 + $0x2d8] sm:$0xff] }
  0xe0   :  { %2136 = vmatprep.subr.bf16.mxu1 %v2135_v18 }
  0xe1   :  { %477 = vmatmul.mubr.f32.gmra.mrb[50].mxu0 %v144_v16  ;;  %2138 = vmatpush1.bf16.msra.mxu1 %v2137_v1  ;;  %v2143_v16 = vpack.c.bf16 %v734_v10, %v732_v9 }
  0xe2   :  { %1819 = vmatprep.mubr.msk.f32.mxu0 %vm73_vm0, %v147_v15  ;;  %2140 = vmatprep.subr.bf16.mxu1 %v2139_v27 }
  0xe5   :  { %483 = vmatmul.mubr.f32.gmra.mrb[52].mxu0 %v148_v22  ;;  %v738_v22 = vld [vmem:[%s4132_s3 + $0x258] sm:$0xff] }
  0xe6   :  { %1820 = vmatprep.mubr.msk.f32.mxu0 %vm73_vm0, %v151_v23  ;;  %v2147_v29 = vpack.c.bf16 %v738_v22, %v736_v20 }
  0xe9   :  { %489 = vmatmul.mubr.f32.gmra.mrb[54].mxu0 %v152_v24 }
 0x109   :  { %v328_v36 = vpop.f32.mrb[0].mxu0 }
 0x10a   :  { %v329_v37 = vadd.f32 %v328_v36, %v3004_v34  ;;  %v330_v38 = vpop.f32.mrb[1].mxu0  ;;  %v737_v36 = vld [vmem:[%s4132_s3 + $0x250] sm:$0xff] }
 0x10b   :  { %v331_v21 = vadd.f32 %v330_v38, %v3008_v35 }
 0x10c   :  { %v495_v39 = vmax.f32 %v329_v37, 0.0 }
 0x10d   :  { %v496_v40 = vmax.f32 %v331_v21, 0.0  ;;  %v740_v21 = vld [vmem:[%s4132_s3 + $0x268] sm:$0xff] }
 0x10e   :  { %551 = vst [vmem:[%s4134_s11] sm:$0xff] %v495_v39 }
 0x10f   :  { %552 = vst [vmem:[%s4134_s11 + $0x8] sm:$0xff] %v496_v40  ;;  %v607_v42 = vmax.f32 %v495_v39, %v496_v40  ;;  %v742_v39 = vld [vmem:[%s4132_s3 + $0x278] sm:$0xff] }
 0x154   :  { %v334_v43 = vpop.f32.mrb[2].mxu0 }
 0x155   :  { %v335_v44 = vadd.f32 %v334_v43, %v3004_v34  ;;  %v336_v28 = vpop.f32.mrb[3].mxu0 }
 0x156   :  { %v337_v45 = vadd.f32 %v336_v28, %v3008_v35  ;;  %v2149_v28 = vpack.c.bf16 %v737_v36, %v735_v32  ;;  %v758_v32 = vld [vmem:[%s4132_s3 + $0x2f8] sm:$0xff] }
 0x157   :  { %v497_v46 = vmax.f32 %v335_v44, 0.0 }
 0x158   :  { %v498_v47 = vmax.f32 %v337_v45, 0.0  ;;  %v340_v49 = vpop.f32.mrb[4].mxu0 }
 0x159   :  { %553 = vst [vmem:[%s4134_s11 + $0x10] sm:$0xff] %v497_v46  ;;  %v341_v50 = vadd.f32 %v340_v49, %v3004_v34  ;;  %v342_v41 = vpop.f32.mrb[5].mxu0  ;;  %v739_v49 = vld [vmem:[%s4132_s3 + $0x260] sm:$0xff] }
 0x15a   :  { %554 = vst [vmem:[%s4134_s11 + $0x18] sm:$0xff] %v498_v47  ;;  %v608_v51 = vmax.f32 %v497_v46, %v498_v47  ;;  %v343_v52 = vadd.f32 %v342_v41, %v3008_v35  ;;  %v2151_v47 = vpack.c.bf16 %v742_v39, %v740_v21 }
 0x15b   :  { %v499_v53 = vmax.f32 %v341_v50, 0.0  ;;  %v741_v50 = vld [vmem:[%s4132_s3 + $0x270] sm:$0xff] }
 0x15c   :  { %v500_v54 = vmax.f32 %v343_v52, 0.0  ;;  %v346_v55 = vpop.f32.mrb[6].mxu0  ;;  %v635_v56 = vmax.f32 %v607_v42, %v608_v51  ;;  %v744_v52 = vld [vmem:[%s4132_s3 + $0x288] sm:$0xff] }
 0x15d   :  { %555 = vst [vmem:[%s4134_s11 + $0x20] sm:$0xff] %v499_v53  ;;  %v347_v48 = vadd.f32 %v346_v55, %v3004_v34  ;;  %v348_v57 = vpop.f32.mrb[7].mxu0 }
 0x15e   :  { %556 = vst [vmem:[%s4134_s11 + $0x28] sm:$0xff] %v500_v54  ;;  %v609_v58 = vmax.f32 %v499_v53, %v500_v54  ;;  %v349_v59 = vadd.f32 %v348_v57, %v3008_v35  ;;  %649 = vst [vmem:[%s4135_s12] sm:$0xff] %v635_v56  ;;  %v746_v53 = vld [vmem:[%s4132_s3 + $0x298] sm:$0xff] }
 0x15f   :  { %v501_v60 = vmax.f32 %v347_v48, 0.0  ;;  %v2153_v48 = vpack.c.bf16 %v741_v50, %v739_v49  ;;  %v760_v49 = vld [vmem:[%s4132_s3 + $0x308] sm:$0xff]  ;;  %v762_v50 = vld [vmem:[%s4132_s3 + $0x318] sm:$0xff] }
 0x160   :  { %v502_v62 = vmax.f32 %v349_v59, 0.0  ;;  %v352_v63 = vpop.f32.mrb[8].mxu0  ;;  %v2155_v59 = vpack.c.bf16 %v746_v53, %v744_v52  ;;  %v761_v52 = vld [vmem:[%s4132_s3 + $0x310] sm:$0xff] }
 0x161   :  { %557 = vst [vmem:[%s4134_s11 + $0x30] sm:$0xff] %v501_v60  ;;  %v353_v2 = vadd.f32 %v352_v63, %v3004_v34  ;;  %v354_v3 = vpop.f32.mrb[9].mxu0 }
 0x162   :  { %558 = vst [vmem:[%s4134_s11 + $0x38] sm:$0xff] %v502_v62  ;;  %v610_v7 = vmax.f32 %v501_v60, %v502_v62  ;;  %v355_v8 = vadd.f32 %v354_v3, %v3008_v35  ;;  %v743_v60 = vld [vmem:[%s4132_s3 + $0x280] sm:$0xff]  ;;  %v745_v62 = vld [vmem:[%s4132_s3 + $0x290] sm:$0xff]  ;;  %v748_v3 = vld [vmem:[%s4132_s3 + $0x2a8] sm:$0xff] }
 0x163   :  { %v503_v0 = vmax.f32 %v353_v2, 0.0  ;;  %v2157_v10 = vpack.c.bf16 %v745_v62, %v743_v60 }
 0x164   :  { %v504_v11 = vmax.f32 %v355_v8, 0.0  ;;  %v358_v12 = vpop.f32.mrb[10].mxu0  ;;  %v636_v13 = vmax.f32 %v609_v58, %v610_v7 }
 0x165   :  { %559 = vst [vmem:[%s4134_s11 + $0x40] sm:$0xff] %v503_v0  ;;  %v359_v14 = vadd.f32 %v358_v12, %v3004_v34  ;;  %v360_v15 = vpop.f32.mrb[11].mxu0  ;;  %v2159_v12 = vpack.c.bf16 %v750_v5, %v748_v3  ;;  %v1271_v3 = vld [vmem:[%s4136_s5 + $0x8] sm:$0xff]  ;;  %v1288_v5 = vld [vmem:[%s4136_s5 + $0x90] sm:$0xff] }
 0x166   :  { %560 = vst [vmem:[%s4134_s11 + $0x48] sm:$0xff] %v504_v11  ;;  %v611_v18 = vmax.f32 %v503_v0, %v504_v11  ;;  %v361_v19 = vadd.f32 %v360_v15, %v3008_v35  ;;  %650 = vst [vmem:[%s4135_s12 + $0x8] sm:$0xff] %v636_v13  ;;  %899 = vmatprep.mubr.f32.mxu1 %v636_v13 }
 0x167   :  { %v505_v1 = vmax.f32 %v359_v14, 0.0  ;;  %900 = vmatmul.mubr.f32.vlgmr.msra.gmra.mrb[0].mxu1 %v635_v56 }
 0x168   :  { %v506_v23 = vmax.f32 %v361_v19, 0.0  ;;  %v364_v24 = vpop.f32.mrb[12].mxu0  ;;  %2142 = vmatpush1.bf16.msra.mxu1 %v2141_v4  ;;  %v749_v4 = vld [vmem:[%s4132_s3 + $0x2b0] sm:$0xff] }
 0x169   :  { %561 = vst [vmem:[%s4134_s11 + $0x50] sm:$0xff] %v505_v1  ;;  %v365_v26 = vadd.f32 %v364_v24, %v3004_v34  ;;  %v366_v27 = vpop.f32.mrb[13].mxu0  ;;  %2144 = vmatprep.subr.bf16.mxu1 %v2143_v16  ;;  %v752_v16 = vld [vmem:[%s4132_s3 + $0x2c8] sm:$0xff]  ;;  %v751_v24 = vld [vmem:[%s4132_s3 + $0x2c0] sm:$0xff] }
 0x16a   :  { %562 = vst [vmem:[%s4134_s11 + $0x58] sm:$0xff] %v506_v23  ;;  %v612_v37 = vmax.f32 %v505_v1, %v506_v23  ;;  %v367_v38 = vadd.f32 %v366_v27, %v3008_v35  ;;  %v2163_v23 = vpack.c.bf16 %v754_v61, %v752_v16 }
 0x16b   :  { %v507_v40 = vmax.f32 %v365_v26, 0.0 }
 0x16c   :  { %v3102_v42 = vmax.f32 %v611_v18, %v612_v37  ;;  %v508_v43 = vmax.f32 %v367_v38, 0.0  ;;  %v370_v44 = vpop.f32.mrb[14].mxu0  ;;  %2146 = vmatpush1.bf16.msra.mxu1 %v2145_v25  ;;  %v753_v25 = vld [vmem:[%s4132_s3 + $0x2d0] sm:$0xff] }
 0x16d   :  { %563 = vst [vmem:[%s4134_s11 + $0x60] sm:$0xff] %v507_v40  ;;  %v371_v45 = vadd.f32 %v370_v44, %v3004_v34  ;;  %v372_v46 = vpop.f32.mrb[15].mxu0  ;;  %2148 = vmatprep.subr.bf16.mxu1 %v2147_v29  ;;  %v756_v29 = vld [vmem:[%s4132_s3 + $0x2e8] sm:$0xff]  ;;  %v2165_v39 = vpack.c.bf16 %v753_v25, %v751_v24 }
 0x16e   :  { %651 = vst [vmem:[%s4135_s12 + $0x10] sm:$0xff] %v3102_v42  ;;  %564 = vst [vmem:[%s4134_s11 + $0x68] sm:$0xff] %v508_v43  ;;  %v613_v41 = vmax.f32 %v507_v40, %v508_v43  ;;  %v373_v51 = vadd.f32 %v372_v46, %v3008_v35  ;;  %905 = vmatprep.mubr.f32.mxu1 %v3102_v42  ;;  %v2167_v44 = vpack.c.bf16 %v758_v32, %v756_v29  ;;  %v768_v24 = vld [vmem:[%s4132_s3 + $0x348] sm:$0xff] }
 0x16f   :  { %v509_v54 = vmax.f32 %v371_v45, 0.0  ;;  %906 = vmatmul.mubr.f32.gmra.mrb[2].mxu1 %v636_v13  ;;  %v747_v13 = vld [vmem:[%s4132_s3 + $0x2a0] sm:$0xff]  ;;  %v757_v45 = vld [vmem:[%s4132_s3 + $0x2f0] sm:$0xff] }
 0x170   :  { %v510_v55 = vmax.f32 %v373_v51, 0.0  ;;  %v376_v56 = vpop.f32.mrb[16].mxu0  ;;  %2150 = vmatpush1.bf16.msra.mxu1 %v2149_v28  ;;  %v2161_v20 = vpack.c.bf16 %v749_v4, %v747_v13  ;;  %v755_v28 = vld [vmem:[%s4132_s3 + $0x2e0] sm:$0xff] }
 0x171   :  { %565 = vst [vmem:[%s4134_s11 + $0x70] sm:$0xff] %v509_v54  ;;  %v377_v57 = vadd.f32 %v376_v56, %v3004_v34  ;;  %v378_v58 = vpop.f32.mrb[17].mxu0  ;;  %2152 = vmatprep.subr.bf16.mxu1 %v2151_v47  ;;  %v3228_v51 = vld [vmem:[%s4132_s3 + $0x300] sm:$0xff]  ;;  %v3236_v56 = vld [vmem:[%s4132_s3 + $0x328] sm:$0xff] }
 0x172   :  { %566 = vst [vmem:[%s4134_s11 + $0x78] sm:$0xff] %v510_v55  ;;  %v614_v63 = vmax.f32 %v509_v54, %v510_v55  ;;  %v379_v2 = vadd.f32 %v378_v58, %v3008_v35  ;;  %v2169_v55 = vpack.c.bf16 %v757_v45, %v755_v28  ;;  %v1287_v58 = vld [vmem:[%s4136_s5 + $0x88] sm:$0xff]  ;;  %v1290_v13 = vld [vmem:[%s4136_s5 + $0xa0] sm:$0xff]  ;;  %v769_v45 = vld [vmem:[%s4132_s3 + $0x350] sm:$0xff] }
 0x173   :  { %v511_v6 = vmax.f32 %v377_v57, 0.0  ;;  %v1286_v57 = vld [vmem:[%s4136_s5 + $0x80] sm:$0xff] }
 0x174   :  { %v3149_v7 = vmax.f32 %v613_v41, %v614_v63  ;;  %v512_v8 = vmax.f32 %v379_v2, 0.0  ;;  %v382_v9 = vpop.f32.mrb[18].mxu0  ;;  %2154 = vmatpush1.bf16.msra.mxu1 %v2153_v48  ;;  %v3241_v48 = vld [vmem:[%s4132_s3 + $0x338] sm:$0xff]  ;;  %v2171_v63 = vpack.c.bf16 %v762_v50, %v760_v49  ;;  %v2235_v2 = vpack.c.bf16 %v1287_v58, %v1286_v57  ;;  %v767_v28 = vld [vmem:[%s4132_s3 + $0x340] sm:$0xff]  ;;  %v1295_v57 = vld [vmem:[%s4136_s5 + $0xc8] sm:$0xff] }
 0x175   :  { %567 = vst [vmem:[%s4134_s11 + $0x80] sm:$0xff] %v511_v6  ;;  %v383_v0 = vadd.f32 %v382_v9, %v3004_v34  ;;  %v384_v11 = vpop.f32.mrb[19].mxu0  ;;  %2156 = vmatprep.subr.bf16.mxu1 %v2155_v59  ;;  %v1270_v59 = vld [vmem:[%s4136_s5] sm:$0xff] }
 0x176   :  { %652 = vst [vmem:[%s4135_s12 + $0x18] sm:$0xff] %v3149_v7  ;;  %568 = vst [vmem:[%s4134_s11 + $0x88] sm:$0xff] %v512_v8  ;;  %v615_v14 = vmax.f32 %v511_v6, %v512_v8  ;;  %v385_v15 = vadd.f32 %v384_v11, %v3008_v35  ;;  %911 = vmatprep.mubr.f32.mxu1 %v3149_v7  ;;  %v1289_v6 = vld [vmem:[%s4136_s5 + $0x98] sm:$0xff]  ;;  %v1272_v11 = vld [vmem:[%s4136_s5 + $0x10] sm:$0xff]  ;;  %2236 = vmatprep.subr.bf16.mxu0 %v2235_v2 }
 0x177   :  { %v513_v17 = vmax.f32 %v383_v0, 0.0  ;;  %912 = vmatmul.mubr.f32.gmra.mrb[4].mxu1 %v3102_v42  ;;  %v2239_v0 = vpack.c.bf16 %v1289_v6, %v1288_v5  ;;  %v771_v2 = vld [vmem:[%s4132_s3 + $0x360] sm:$0xff] }
 0x178   :  { %v514_v18 = vmax.f32 %v385_v15, 0.0  ;;  %v388_v19 = vpop.f32.mrb[20].mxu0  ;;  %2158 = vmatpush1.bf16.msra.mxu1 %v2157_v10  ;;  %v2237_v10 = vpack.c.bf16 %v1271_v3, %v1270_v59  ;;  %v773_v3 = vld [vmem:[%s4132_s3 + $0x370] sm:$0xff] }
 0x179   :  { %569 = vst [vmem:[%s4134_s11 + $0x90] sm:$0xff] %v513_v17  ;;  %v389_v22 = vadd.f32 %v388_v19, %v3004_v34  ;;  %v390_v1 = vpop.f32.mrb[21].mxu0  ;;  %2160 = vmatprep.subr.bf16.mxu1 %v2159_v12  ;;  %v1273_v12 = vld [vmem:[%s4136_s5 + $0x18] sm:$0xff]  ;;  %v765_v19 = vld [vmem:[%s4132_s3 + $0x330] sm:$0xff] }
 0x17a   :  { %570 = vst [vmem:[%s4134_s11 + $0x98] sm:$0xff] %v514_v18  ;;  %v616_v26 = vmax.f32 %v513_v17, %v514_v18  ;;  %v391_v27 = vadd.f32 %v390_v1, %v3008_v35  ;;  %v2173_v17 = vpack.c.bf16 %v761_v52, %v3228_v51  ;;  %v763_v18 = vld [vmem:[%s4132_s3 + $0x320] sm:$0xff]  ;;  %2238 = vmatpush3.bf16.msra.mxu0 %v2237_v10  ;;  %v1276_v52 = vld [vmem:[%s4136_s5 + $0x30] sm:$0xff]  ;;  %v776_v10 = vld [vmem:[%s4132_s3 + $0x388] sm:$0xff] }
 0x17b   :  { %v515_v36 = vmax.f32 %v389_v22, 0.0  ;;  %2240 = vmatprep.subr.bf16.mxu0 %v2239_v0 }
 0x17c   :  { %v3197_v37 = vmax.f32 %v615_v14, %v616_v26  ;;  %v516_v38 = vmax.f32 %v391_v27, 0.0  ;;  %v394_v21 = vpop.f32.mrb[22].mxu0  ;;  %2162 = vmatpush1.bf16.msra.mxu1 %v2161_v20  ;;  %v1291_v14 = vld [vmem:[%s4136_s5 + $0xa8] sm:$0xff]  ;;  %v2241_v20 = vpack.c.bf16 %v1273_v12, %v1272_v11  ;;  %v1274_v26 = vld [vmem:[%s4136_s5 + $0x20] sm:$0xff] }
 0x17d   :  { %571 = vst [vmem:[%s4134_s11 + $0xa0] sm:$0xff] %v515_v36  ;;  %v395_v40 = vadd.f32 %v394_v21, %v3004_v34  ;;  %v396_v43 = vpop.f32.mrb[23].mxu0  ;;  %2164 = vmatprep.subr.bf16.mxu1 %v2163_v23  ;;  %v2175_v23 = vpack.c.bf16 %v3241_v48, %v3236_v56  ;;  %v2243_v25 = vpack.c.bf16 %v1291_v14, %v1290_v13  ;;  %v1275_v27 = vld [vmem:[%s4136_s5 + $0x28] sm:$0xff]  ;;  %v1293_v21 = vld [vmem:[%s4136_s5 + $0xb8] sm:$0xff]  ;;  %v1294_v48 = vld [vmem:[%s4136_s5 + $0xc0] sm:$0xff] }
 0x17e   :  { %653 = vst [vmem:[%s4135_s12 + $0x20] sm:$0xff] %v3197_v37  ;;  %572 = vst [vmem:[%s4134_s11 + $0xa8] sm:$0xff] %v516_v38  ;;  %v617_v46 = vmax.f32 %v515_v36, %v516_v38  ;;  %v397_v47 = vadd.f32 %v396_v43, %v3008_v35  ;;  %917 = vmatprep.mubr.f32.mxu1 %v3197_v37  ;;  %v770_v36 = vld [vmem:[%s4132_s3 + $0x358] sm:$0xff]  ;;  %v1292_v38 = vld [vmem:[%s4136_s5 + $0xb0] sm:$0xff]  ;;  %2242 = vmatpush3.bf16.msra.mxu0 %v2241_v20 }
 0x17f   :  { %v517_v41 = vmax.f32 %v395_v40, 0.0  ;;  %918 = vmatmul.mubr.f32.gmra.mrb[6].mxu1 %v3149_v7  ;;  %v2179_v50 = vpack.c.bf16 %v770_v36, %v768_v24  ;;  %2244 = vmatprep.subr.bf16.mxu0 %v2243_v25  ;;  %v2247_v51 = vpack.c.bf16 %v1293_v21, %v1292_v38  ;;  %v774_v56 = vld [vmem:[%s4132_s3 + $0x378] sm:$0xff]  ;;  %v2251_v0 = vpack.c.bf16 %v1295_v57, %v1294_v48  ;;  %v1278_v11 = vld [vmem:[%s4136_s5 + $0x40] sm:$0xff]  ;;  %v1279_v12 = vld [vmem:[%s4136_s5 + $0x48] sm:$0xff] }
 0x180   :  { %v518_v53 = vmax.f32 %v397_v47, 0.0  ;;  %v400_v54 = vpop.f32.mrb[24].mxu0  ;;  %2166 = vmatpush1.bf16.msra.mxu1 %v2165_v39  ;;  %v778_v14 = vld [vmem:[%s4132_s3 + $0x398] sm:$0xff]  ;;  %v2185_v20 = vpack.c.bf16 %v773_v3, %v771_v2 }
 0x181   :  { %573 = vst [vmem:[%s4134_s11 + $0xb0] sm:$0xff] %v517_v41  ;;  %v401_v60 = vadd.f32 %v400_v54, %v3004_v34  ;;  %v402_v62 = vpop.f32.mrb[25].mxu0  ;;  %2168 = vmatprep.subr.bf16.mxu1 %v2167_v44  ;;  %v2177_v44 = vpack.c.bf16 %v765_v19, %v763_v18  ;;  %v1281_v36 = vld [vmem:[%s4136_s5 + $0x58] sm:$0xff] }
 0x182   :  { %574 = vst [vmem:[%s4134_s11 + $0xb8] sm:$0xff] %v518_v53  ;;  %v618_v8 = vmax.f32 %v517_v41, %v518_v53  ;;  %v403_v9 = vadd.f32 %v402_v62, %v3008_v35  ;;  %v772_v41 = vld [vmem:[%s4132_s3 + $0x368] sm:$0xff]  ;;  %v1277_v53 = vld [vmem:[%s4136_s5 + $0x38] sm:$0xff] }
 0x183   :  { %v519_v4 = vmax.f32 %v401_v60, 0.0  ;;  %v2249_v5 = vpack.c.bf16 %v1277_v53, %v1276_v52  ;;  %v781_v53 = vld [vmem:[%s4132_s3 + $0x3b0] sm:$0xff] }
 0x184   :  { %v3281_v15 = vmax.f32 %v617_v46, %v618_v8  ;;  %v520_v16 = vmax.f32 %v403_v9, 0.0  ;;  %v406_v61 = vpop.f32.mrb[26].mxu0  ;;  %2170 = vmatpush1.bf16.msra.mxu1 %v2169_v55  ;;  %v2245_v46 = vpack.c.bf16 %v1275_v27, %v1274_v26  ;;  %v2183_v9 = vpack.c.bf16 %v774_v56, %v772_v41  ;;  %v780_v27 = vld [vmem:[%s4132_s3 + $0x3a8] sm:$0xff] }
 0x185   :  { %575 = vst [vmem:[%s4134_s11 + $0xc0] sm:$0xff] %v519_v4  ;;  %v407_v22 = vadd.f32 %v406_v61, %v3004_v34  ;;  %v408_v1 = vpop.f32.mrb[27].mxu0  ;;  %2172 = vmatprep.subr.bf16.mxu1 %v2171_v63  ;;  %v2181_v63 = vpack.c.bf16 %v769_v45, %v767_v28  ;;  %v1297_v61 = vld [vmem:[%s4136_s5 + $0xd8] sm:$0xff]  ;;  %v2187_v26 = vpack.c.bf16 %v778_v14, %v776_v10  ;;  %v1283_v56 = vld [vmem:[%s4136_s5 + $0x68] sm:$0xff]  ;;  %v783_v10 = vld [vmem:[%s4132_s3 + $0x3c0] sm:$0xff] }
 0x186   :  { %654 = vst [vmem:[%s4135_s12 + $0x28] sm:$0xff] %v3281_v15  ;;  %576 = vst [vmem:[%s4134_s11 + $0xc8] sm:$0xff] %v520_v16  ;;  %v619_v29 = vmax.f32 %v519_v4, %v520_v16  ;;  %v409_v32 = vadd.f32 %v408_v1, %v3008_v35  ;;  %923 = vmatprep.mubr.f32.mxu1 %v3281_v15  ;;  %2246 = vmatpush3.bf16.msra.mxu0 %v2245_v46  ;;  %v1296_v16 = vld [vmem:[%s4136_s5 + $0xd0] sm:$0xff] }
 0x187   :  { %v521_v39 = vmax.f32 %v407_v22, 0.0  ;;  %924 = vmatmul.mubr.f32.gmra.mrb[8].mxu1 %v3197_v37  ;;  %2248 = vmatprep.subr.bf16.mxu0 %v2247_v51  ;;  %v775_v22 = vld [vmem:[%s4132_s3 + $0x380] sm:$0xff]  ;;  %v777_v1 = vld [vmem:[%s4132_s3 + $0x390] sm:$0xff] }
 0x188   :  { %v522_v40 = vmax.f32 %v409_v32, 0.0  ;;  %v412_v43 = vpop.f32.mrb[28].mxu0  ;;  %2174 = vmatpush1.bf16.msra.mxu1 %v2173_v17  ;;  %v1280_v32 = vld [vmem:[%s4136_s5 + $0x50] sm:$0xff] }
 0x189   :  { %577 = vst [vmem:[%s4134_s11 + $0xd0] sm:$0xff] %v521_v39  ;;  %v413_v47 = vadd.f32 %v412_v43, %v3004_v34  ;;  %v414_v49 = vpop.f32.mrb[29].mxu0  ;;  %2176 = vmatprep.subr.bf16.mxu1 %v2175_v23  ;;  %v2253_v23 = vpack.c.bf16 %v1279_v12, %v1278_v11  ;;  %v1299_v43 = vld [vmem:[%s4136_s5 + $0xe8] sm:$0xff] }
 0x18a   :  { %578 = vst [vmem:[%s4134_s11 + $0xd8] sm:$0xff] %v522_v40  ;;  %v620_v54 = vmax.f32 %v521_v39, %v522_v40  ;;  %v415_v55 = vadd.f32 %v414_v49, %v3008_v35  ;;  %2250 = vmatpush3.bf16.msra.mxu0 %v2249_v5  ;;  %v782_v39 = vld [vmem:[%s4132_s3 + $0x3b8] sm:$0xff]  ;;  %v1298_v40 = vld [vmem:[%s4136_s5 + $0xe0] sm:$0xff] }
 0x18b   :  { %v523_v58 = vmax.f32 %v413_v47, 0.0  ;;  %2252 = vmatprep.subr.bf16.mxu0 %v2251_v0  ;;  %v2189_v47 = vpack.c.bf16 %v777_v1, %v775_v22  ;;  %v779_v49 = vld [vmem:[%s4132_s3 + $0x3a0] sm:$0xff]  ;;  %v2191_v52 = vpack.c.bf16 %v782_v39, %v780_v27  ;;  %v785_v0 = vld [vmem:[%s4132_s3 + $0x3d0] sm:$0xff]  ;;  %v794_v27 = vld [vmem:[%s4132_s3 + $0x418] sm:$0xff] }
 0x18c   :  { %v3356_v59 = vmax.f32 %v619_v29, %v620_v54  ;;  %v524_v60 = vmax.f32 %v415_v55, 0.0  ;;  %v418_v62 = vpop.f32.mrb[30].mxu0  ;;  %2178 = vmatpush1.bf16.msra.mxu1 %v2177_v44  ;;  %v2255_v29 = vpack.c.bf16 %v1297_v61, %v1296_v16  ;;  %v2259_v54 = vpack.c.bf16 %v1299_v43, %v1298_v40  ;;  %v1282_v55 = vld [vmem:[%s4136_s5 + $0x60] sm:$0xff] }
 0x18d   :  { %579 = vst [vmem:[%s4134_s11 + $0xe0] sm:$0xff] %v523_v58  ;;  %v419_v6 = vadd.f32 %v418_v62, %v3004_v34  ;;  %v420_v8 = vpop.f32.mrb[31].mxu0  ;;  %2180 = vmatprep.subr.bf16.mxu1 %v2179_v50  ;;  %v2257_v50 = vpack.c.bf16 %v1281_v36, %v1280_v32  ;;  %v2193_v3 = vpack.c.bf16 %v781_v53, %v779_v49  ;;  %v787_v1 = vld [vmem:[%s4132_s3 + $0x3e0] sm:$0xff] }
 0x18e   :  { %655 = vst [vmem:[%s4135_s12 + $0x30] sm:$0xff] %v3356_v59  ;;  %580 = vst [vmem:[%s4134_s11 + $0xe8] sm:$0xff] %v524_v60  ;;  %v621_v13 = vmax.f32 %v523_v58, %v524_v60  ;;  %v421_v4 = vadd.f32 %v420_v8, %v3008_v35  ;;  %929 = vmatprep.mubr.f32.mxu1 %v3356_v59  ;;  %2254 = vmatpush3.bf16.msra.mxu0 %v2253_v23  ;;  %v784_v58 = vld [vmem:[%s4132_s3 + $0x3c8] sm:$0xff]  ;;  %v786_v60 = vld [vmem:[%s4132_s3 + $0x3d8] sm:$0xff] }
 0x18f   :  { %v525_v17 = vmax.f32 %v419_v6, 0.0  ;;  %930 = vmatmul.mubr.f32.gmra.mrb[10].mxu1 %v3281_v15  ;;  %2256 = vmatprep.subr.bf16.mxu0 %v2255_v29  ;;  %v2261_v5 = vpack.c.bf16 %v1283_v56, %v1282_v55  ;;  %v789_v23 = vld [vmem:[%s4132_s3 + $0x3f0] sm:$0xff] }
 0x190   :  { %v526_v18 = vmax.f32 %v421_v4, 0.0  ;;  %v424_v19 = vpop.f32.mrb[32].mxu0  ;;  %2182 = vmatpush1.bf16.msra.mxu1 %v2181_v63  ;;  %v790_v4 = vld [vmem:[%s4132_s3 + $0x3f8] sm:$0xff] }
 0x191   :  { %581 = vst [vmem:[%s4134_s11 + $0xf0] sm:$0xff] %v525_v17  ;;  %v425_v24 = vadd.f32 %v424_v19, %v3004_v34  ;;  %v426_v25 = vpop.f32.mrb[33].mxu0  ;;  %2184 = vmatprep.subr.bf16.mxu1 %v2183_v9  ;;  %v2195_v9 = vpack.c.bf16 %v786_v60, %v784_v58 }
 0x192   :  { %582 = vst [vmem:[%s4134_s11 + $0xf8] sm:$0xff] %v526_v18  ;;  %v622_v38 = vmax.f32 %v525_v17, %v526_v18  ;;  %v427_v21 = vadd.f32 %v426_v25, %v3008_v35  ;;  %2258 = vmatpush3.bf16.msra.mxu0 %v2257_v50  ;;  %v2197_v18 = vpack.c.bf16 %v785_v0, %v783_v10  ;;  %v796_v0 = vld [vmem:[%s4132_s3 + $0x428] sm:$0xff] }
 0x193   :  { %v527_v44 = vmax.f32 %v425_v24, 0.0  ;;  %2260 = vmatprep.subr.bf16.mxu0 %v2259_v54 }
 0x194   :  { %v3428_v28 = vmax.f32 %v621_v13, %v622_v38  ;;  %v528_v45 = vmax.f32 %v427_v21, 0.0  ;;  %v430_v46 = vpop.f32.mrb[34].mxu0  ;;  %2186 = vmatpush1.bf16.msra.mxu1 %v2185_v20  ;;  %v788_v13 = vld [vmem:[%s4132_s3 + $0x3e8] sm:$0xff]  ;;  %v2201_v38 = vpack.c.bf16 %v789_v23, %v787_v1 }
 0x195   :  { %583 = vst [vmem:[%s4134_s11 + $0x100] sm:$0xff] %v527_v44  ;;  %v431_v41 = vadd.f32 %v430_v46, %v3004_v34  ;;  %v432_v51 = vpop.f32.mrb[35].mxu0  ;;  %2188 = vmatprep.subr.bf16.mxu1 %v2187_v26  ;;  %v2199_v22 = vpack.c.bf16 %v790_v4, %v788_v13  ;;  %v792_v26 = vld [vmem:[%s4132_s3 + $0x408] sm:$0xff] }
 0x196   :  { %656 = vst [vmem:[%s4135_s12 + $0x38] sm:$0xff] %v3428_v28  ;;  %584 = vst [vmem:[%s4134_s11 + $0x108] sm:$0xff] %v528_v45  ;;  %v623_v48 = vmax.f32 %v527_v44, %v528_v45  ;;  %v433_v57 = vadd.f32 %v432_v51, %v3008_v35  ;;  %935 = vmatprep.mubr.f32.mxu1 %v3428_v28  ;;  %2262 = vmatpush3.bf16.msra.mxu0 %v2261_v5  ;;  %v800_v23 = vld [vmem:[%s4132_s3 + $0x448] sm:$0xff] }
 0x197   :  { %v529_v62 = vmax.f32 %v431_v41, 0.0  ;;  %936 = vmatmul.mubr.f32.gmra.mrb[12].mxu1 %v3356_v59  ;;  %v2203_v40 = vpack.c.bf16 %v794_v27, %v792_v26 }
 0x198   :  { %v530_v63 = vmax.f32 %v433_v57, 0.0  ;;  %v436_v2 = vpop.f32.mrb[36].mxu0  ;;  %2190 = vmatpush1.bf16.msra.mxu1 %v2189_v47 }
 0x199   :  { %585 = vst [vmem:[%s4134_s11 + $0x110] sm:$0xff] %v529_v62  ;;  %v437_v6 = vadd.f32 %v436_v2, %v3004_v34  ;;  %v438_v8 = vpop.f32.mrb[37].mxu0  ;;  %2192 = vmatprep.subr.bf16.mxu1 %v2191_v52 }
 0x19a   :  { %586 = vst [vmem:[%s4134_s11 + $0x118] sm:$0xff] %v530_v63  ;;  %v624_v11 = vmax.f32 %v529_v62, %v530_v63  ;;  %v439_v12 = vadd.f32 %v438_v8, %v3008_v35  ;;  %v793_v8 = vld [vmem:[%s4132_s3 + $0x410] sm:$0xff] }
 0x19b   :  { %v531_v14 = vmax.f32 %v437_v6, 0.0  ;;  %v791_v6 = vld [vmem:[%s4132_s3 + $0x400] sm:$0xff] }
 0x19c   :  { %v3482_v16 = vmax.f32 %v623_v48, %v624_v11  ;;  %v532_v61 = vmax.f32 %v439_v12, 0.0  ;;  %v442_v17 = vpop.f32.mrb[38].mxu0  ;;  %2194 = vmatpush1.bf16.msra.mxu1 %v2193_v3  ;;  %v798_v11 = vld [vmem:[%s4132_s3 + $0x438] sm:$0xff] }
 0x19d   :  { %587 = vst [vmem:[%s4134_s11 + $0x120] sm:$0xff] %v531_v14  ;;  %v443_v19 = vadd.f32 %v442_v17, %v3004_v34  ;;  %v444_v20 = vpop.f32.mrb[39].mxu0  ;;  %2196 = vmatprep.subr.bf16.mxu1 %v2195_v9 }
 0x19e   :  { %657 = vst [vmem:[%s4135_s12 + $0x40] sm:$0xff] %v3482_v16  ;;  %588 = vst [vmem:[%s4134_s11 + $0x128] sm:$0xff] %v532_v61  ;;  %v625_v24 = vmax.f32 %v531_v14, %v532_v61  ;;  %v445_v25 = vadd.f32 %v444_v20, %v3008_v35  ;;  %941 = vmatprep.mubr.f32.mxu1 %v3482_v16  ;;  %v2205_v14 = vpack.c.bf16 %v793_v8, %v791_v6  ;;  %v797_v20 = vld [vmem:[%s4132_s3 + $0x430] sm:$0xff] }
 0x19f   :  { %v533_v29 = vmax.f32 %v443_v19, 0.0  ;;  %942 = vmatmul.mubr.f32.gmra.mrb[14].mxu1 %v3428_v28  ;;  %v795_v19 = vld [vmem:[%s4132_s3 + $0x420] sm:$0xff] }
 0x1a0   :  { %v534_v32 = vmax.f32 %v445_v25, 0.0  ;;  %v448_v36 = vpop.f32.mrb[40].mxu0  ;;  %2198 = vmatpush1.bf16.msra.mxu1 %v2197_v18  ;;  %v2207_v18 = vpack.c.bf16 %v798_v11, %v796_v0 }
 0x1a1   :  { %589 = vst [vmem:[%s4134_s11 + $0x130] sm:$0xff] %v533_v29  ;;  %v449_v21 = vadd.f32 %v448_v36, %v3004_v34  ;;  %v450_v39 = vpop.f32.mrb[41].mxu0  ;;  %2200 = vmatprep.subr.bf16.mxu1 %v2199_v22 }
 0x1a2   :  { %590 = vst [vmem:[%s4134_s11 + $0x138] sm:$0xff] %v534_v32  ;;  %v626_v43 = vmax.f32 %v533_v29, %v534_v32  ;;  %v451_v44 = vadd.f32 %v450_v39, %v3008_v35  ;;  %v2209_v32 = vpack.c.bf16 %v797_v20, %v795_v19  ;;  %v801_v39 = vld [vmem:[%s4132_s3 + $0x450] sm:$0xff]  ;;  %v816_v19 = vld [vmem:[%s4132_s3 + $0x4c8] sm:$0xff]  ;;  %v818_v20 = vld [vmem:[%s4132_s3 + $0x4d8] sm:$0xff] }
 0x1a3   :  { %v535_v45 = vmax.f32 %v449_v21, 0.0 }
 0x1a4   :  { %v3518_v46 = vmax.f32 %v625_v24, %v626_v43  ;;  %v536_v47 = vmax.f32 %v451_v44, 0.0  ;;  %v454_v49 = vpop.f32.mrb[42].mxu0  ;;  %2202 = vmatpush1.bf16.msra.mxu1 %v2201_v38  ;;  %v802_v24 = vld [vmem:[%s4132_s3 + $0x458] sm:$0xff]  ;;  %v804_v44 = vld [vmem:[%s4132_s3 + $0x468] sm:$0xff] }
 0x1a5   :  { %591 = vst [vmem:[%s4134_s11 + $0x140] sm:$0xff] %v535_v45  ;;  %v455_v50 = vadd.f32 %v454_v49, %v3004_v34  ;;  %v456_v41 = vpop.f32.mrb[43].mxu0  ;;  %2204 = vmatprep.subr.bf16.mxu1 %v2203_v40  ;;  %v2211_v21 = vpack.c.bf16 %v802_v24, %v800_v23  ;;  %v2227_v23 = vpack.c.bf16 %v818_v20, %v816_v19  ;;  %v815_v24 = vld [vmem:[%s4132_s3 + $0x4c0] sm:$0xff] }
 0x1a6   :  { %658 = vst [vmem:[%s4135_s12 + $0x48] sm:$0xff] %v3518_v46  ;;  %592 = vst [vmem:[%s4134_s11 + $0x148] sm:$0xff] %v536_v47  ;;  %v627_v51 = vmax.f32 %v535_v45, %v536_v47  ;;  %v457_v52 = vadd.f32 %v456_v41, %v3008_v35  ;;  %947 = vmatprep.mubr.f32.mxu1 %v3518_v46  ;;  %v806_v45 = vld [vmem:[%s4132_s3 + $0x478] sm:$0xff] }
 0x1a7   :  { %v537_v53 = vmax.f32 %v455_v50, 0.0  ;;  %948 = vmatmul.mubr.f32.gmra.mrb[16].mxu1 %v3482_v16 }
 0x1a8   :  { %v538_v54 = vmax.f32 %v457_v52, 0.0  ;;  %v460_v55 = vpop.f32.mrb[44].mxu0 }
 0x1a9   :  { %593 = vst [vmem:[%s4134_s11 + $0x150] sm:$0xff] %v537_v53  ;;  %v461_v56 = vadd.f32 %v460_v55, %v3004_v34  ;;  %v462_v48 = vpop.f32.mrb[45].mxu0 }
 0x1aa   :  { %594 = vst [vmem:[%s4134_s11 + $0x158] sm:$0xff] %v538_v54  ;;  %v628_v57 = vmax.f32 %v537_v53, %v538_v54  ;;  %v463_v58 = vadd.f32 %v462_v48, %v3008_v35  ;;  %v2215_v53 = vpack.c.bf16 %v806_v45, %v804_v44  ;;  %v803_v54 = vld [vmem:[%s4132_s3 + $0x460] sm:$0xff]  ;;  %v808_v48 = vld [vmem:[%s4132_s3 + $0x488] sm:$0xff]  ;;  %v1336_v44 = vld [vmem:[%s4136_s5 + $0x210] sm:$0xff] }
 0x1ab   :  { %v539_v60 = vmax.f32 %v461_v56, 0.0  ;;  %v1337_v45 = vld [vmem:[%s4136_s5 + $0x218] sm:$0xff] }
 0x1ac   :  { %v3542_v62 = vmax.f32 %v627_v51, %v628_v57  ;;  %v540_v63 = vmax.f32 %v463_v58, 0.0  ;;  %v466_v2 = vpop.f32.mrb[46].mxu0  ;;  %v810_v57 = vld [vmem:[%s4132_s3 + $0x498] sm:$0xff] }
 0x1ad   :  { %595 = vst [vmem:[%s4134_s11 + $0x160] sm:$0xff] %v539_v60  ;;  %v467_v3 = vadd.f32 %v466_v2, %v3004_v34  ;;  %v468_v5 = vpop.f32.mrb[47].mxu0  ;;  %v2219_v8 = vpack.c.bf16 %v810_v57, %v808_v48  ;;  %v1343_v48 = vld [vmem:[%s4136_s5 + $0x248] sm:$0xff] }
 0x1ae   :  { %659 = vst [vmem:[%s4135_s12 + $0x50] sm:$0xff] %v3542_v62  ;;  %596 = vst [vmem:[%s4134_s11 + $0x168] sm:$0xff] %v540_v63  ;;  %v629_v9 = vmax.f32 %v539_v60, %v540_v63  ;;  %v469_v10 = vadd.f32 %v468_v5, %v3008_v35  ;;  %953 = vmatprep.mubr.f32.mxu1 %v3542_v62 }
 0x1af   :  { %v541_v12 = vmax.f32 %v467_v3, 0.0  ;;  %954 = vmatmul.mubr.f32.gmra.mrb[18].mxu1 %v3518_v46 }
 0x1b0   :  { %v542_v13 = vmax.f32 %v469_v10, 0.0  ;;  %1024 = vmatprep.mubr.f32.mxu1 %v3149_v7  ;;  %v472_v4 = vpop.f32.mrb[48].mxu0  ;;  %v809_v10 = vld [vmem:[%s4132_s3 + $0x490] sm:$0xff] }
 0x1b1   :  { %597 = vst [vmem:[%s4134_s11 + $0x170] sm:$0xff] %v541_v12  ;;  %v473_v61 = vadd.f32 %v472_v4, %v3004_v34  ;;  %v474_v17 = vpop.f32.mrb[49].mxu0 }
 0x1b2   :  { %598 = vst [vmem:[%s4134_s11 + $0x178] sm:$0xff] %v542_v13  ;;  %v630_v22 = vmax.f32 %v541_v12, %v542_v13  ;;  %v475_v1 = vadd.f32 %v474_v17, %v3008_v35  ;;  %v814_v12 = vld [vmem:[%s4132_s3 + $0x4b8] sm:$0xff]  ;;  %v813_v17 = vld [vmem:[%s4132_s3 + $0x4b0] sm:$0xff] }
 0x1b3   :  { %v543_v25 = vmax.f32 %v473_v61, 0.0  ;;  %1025 = vmatmul.mubr.f32.vlgmr.msra.gmra.mrb[0].mxu1 %v3102_v42  ;;  %v799_v42 = vld [vmem:[%s4132_s3 + $0x440] sm:$0xff] }
 0x1b4   :  { %v3592_v26 = vmax.f32 %v629_v9, %v630_v22  ;;  %v544_v27 = vmax.f32 %v475_v1, 0.0  ;;  %2206 = vmatpush1.bf16.msra.mxu1 %v2205_v14  ;;  %v478_v29 = vpop.f32.mrb[50].mxu0  ;;  %1030 = vmatprep.mubr.f32.mxu1 %v3197_v37  ;;  %v2213_v41 = vpack.c.bf16 %v801_v39, %v799_v42  ;;  %v807_v9 = vld [vmem:[%s4132_s3 + $0x480] sm:$0xff]  ;;  %v2428_v39 = vmov 0.0  }
 0x1b5   :  { %599 = vst [vmem:[%s4134_s11 + $0x180] sm:$0xff] %v543_v25  ;;  %v479_v36 = vadd.f32 %v478_v29, %v3004_v34  ;;  %v480_v38 = vpop.f32.mrb[51].mxu0  ;;  %2208 = vmatprep.subr.bf16.mxu1 %v2207_v18  ;;  %v811_v61 = vld [vmem:[%s4132_s3 + $0x4a0] sm:$0xff]  ;;  %v822_v29 = vld [vmem:[%s4132_s3 + $0x4f8] sm:$0xff] }
 0x1b6   :  { %660 = vst [vmem:[%s4135_s12 + $0x58] sm:$0xff] %v3592_v26  ;;  %600 = vst [vmem:[%s4134_s11 + $0x188] sm:$0xff] %v544_v27  ;;  %v631_v40 = vmax.f32 %v543_v25, %v544_v27  ;;  %v481_v43 = vadd.f32 %v480_v38, %v3008_v35  ;;  %v2225_v22 = vpack.c.bf16 %v813_v17, %v811_v61  ;;  %v817_v25 = vld [vmem:[%s4132_s3 + $0x4d0] sm:$0xff]  ;;  %v820_v27 = vld [vmem:[%s4132_s3 + $0x4e8] sm:$0xff] }
 0x1b7   :  { %v545_v47 = vmax.f32 %v479_v36, 0.0  ;;  %1031 = vmatmul.mubr.f32.gmra.mrb[2].mxu1 %v3149_v7  ;;  %v805_v7 = vld [vmem:[%s4132_s3 + $0x470] sm:$0xff]  ;;  %v2231_v36 = vpack.c.bf16 %v822_v29, %v820_v27  ;;  %v819_v38 = vld [vmem:[%s4132_s3 + $0x4e0] sm:$0xff] }
 0x1b8   :  { %v546_v49 = vmax.f32 %v481_v43, 0.0  ;;  %1036 = vmatprep.mubr.f32.mxu1 %v3281_v15  ;;  %2210 = vmatpush1.bf16.msra.mxu1 %v2209_v32  ;;  %v484_v50 = vpop.f32.mrb[52].mxu0  ;;  %v2217_v2 = vpack.c.bf16 %v805_v7, %v803_v54  ;;  %v2229_v32 = vpack.c.bf16 %v817_v25, %v815_v24  ;;  %v1340_v54 = vld [vmem:[%s4136_s5 + $0x230] sm:$0xff]  ;;  %v1341_v7 = vld [vmem:[%s4136_s5 + $0x238] sm:$0xff] }
 0x1b9   :  { %601 = vst [vmem:[%s4134_s11 + $0x190] sm:$0xff] %v545_v47  ;;  %2212 = vmatprep.subr.bf16.mxu1 %v2211_v21  ;;  %v485_v51 = vadd.f32 %v484_v50, %v3004_v34  ;;  %v486_v52 = vpop.f32.mrb[53].mxu0  ;;  %v821_v21 = vld [vmem:[%s4132_s3 + $0x4f0] sm:$0xff]  ;;  %v1319_v50 = vld [vmem:[%s4136_s5 + $0x188] sm:$0xff] }
 0x1ba   :  { %602 = vst [vmem:[%s4134_s11 + $0x198] sm:$0xff] %v546_v49  ;;  %v632_v55 = vmax.f32 %v545_v47, %v546_v49  ;;  %v487_v56 = vadd.f32 %v486_v52, %v3008_v35  ;;  %v2233_v42 = vpack.c.bf16 %v821_v21, %v819_v38  ;;  %v2303_v47 = vpack.c.bf16 %v1337_v45, %v1336_v44  ;;  %v1318_v49 = vld [vmem:[%s4136_s5 + $0x180] sm:$0xff]  ;;  %v1339_v52 = vld [vmem:[%s4136_s5 + $0x228] sm:$0xff]  ;;  %v1320_v44 = vld [vmem:[%s4136_s5 + $0x190] sm:$0xff] }
 0x1bb   :  { %1037 = vmatmul.mubr.f32.gmra.mrb[4].mxu1 %v3197_v37  ;;  %v547_v58 = vmax.f32 %v485_v51, 0.0  ;;  %v1338_v51 = vld [vmem:[%s4136_s5 + $0x220] sm:$0xff]  ;;  %v1321_v45 = vld [vmem:[%s4136_s5 + $0x198] sm:$0xff] }
 0x1bc   :  { %1042 = vmatprep.mubr.f32.mxu1 %v3356_v59  ;;  %2214 = vmatpush1.bf16.msra.mxu1 %v2213_v41  ;;  %v548_v60 = vmax.f32 %v487_v56, 0.0  ;;  %v490_v63 = vpop.f32.mrb[54].mxu0  ;;  %v3643_v3 = vmax.f32 %v631_v40, %v632_v55  ;;  %v1285_v40 = vld [vmem:[%s4136_s5 + $0x78] sm:$0xff]  ;;  %v2267_v41 = vpack.c.bf16 %v1319_v50, %v1318_v49  ;;  %v2309_v55 = vpack.c.bf16 %v1341_v7, %v1340_v54  ;;  %v1342_v56 = vld [vmem:[%s4136_s5 + $0x240] sm:$0xff]  ;;  %v1304_v7 = vld [vmem:[%s4136_s5 + $0x110] sm:$0xff] }
 0x1bd   :  { %603 = vst [vmem:[%s4134_s11 + $0x1a0] sm:$0xff] %v547_v58  ;;  %v491_v5 = vadd.f32 %v490_v63, %v3004_v34  ;;  %v492_v6 = vpop.f32.mrb[55].mxu0  ;;  %2216 = vmatprep.subr.bf16.mxu1 %v2215_v53  ;;  %v812_v34 = vld [vmem:[%s4132_s3 + $0x4a8] sm:$0xff]  ;;  %v2306_v53 = vpack.c.bf16 %v1339_v52, %v1338_v51  ;;  %v2312_v57 = vpack.c.bf16 %v1343_v48, %v1342_v56 }
 0x1be   :  { %604 = vst [vmem:[%s4134_s11 + $0x1a8] sm:$0xff] %v548_v60  ;;  %v633_v0 = vmax.f32 %v547_v58, %v548_v60  ;;  %v493_v11 = vadd.f32 %v492_v6, %v3008_v35  ;;  %661 = vst [vmem:[%s4135_s12 + $0x60] sm:$0xff] %v3643_v3  ;;  %v2221_v35 = vpack.c.bf16 %v809_v10, %v807_v9  ;;  %v1344_v58 = vld [vmem:[%s4136_s5 + $0x250] sm:$0xff]  ;;  %v1345_v60 = vld [vmem:[%s4136_s5 + $0x258] sm:$0xff] }
 0x1bf   :  { %v549_v13 = vmax.f32 %v491_v5, 0.0  ;;  %1043 = vmatmul.mubr.f32.gmra.mrb[6].mxu1 %v3281_v15  ;;  %v2223_v14 = vpack.c.bf16 %v814_v12, %v812_v34  ;;  %v2315_v63 = vpack.c.bf16 %v1345_v60, %v1344_v58  ;;  %v1348_v6 = vld [vmem:[%s4136_s5 + $0x270] sm:$0xff]  ;;  %v823_v10 = vld [vmem:[%s4137_s4] sm:$0x3]  ;;  %v2271_v54 = vpack.c.bf16 %v1321_v45, %v1320_v44  ;;  %v1323_v58 = vld [vmem:[%s4136_s5 + $0x1a8] sm:$0xff] }
 0x1c0   :  { %v550_v4 = vmax.f32 %v493_v11, 0.0  ;;  %1048 = vmatprep.mubr.f32.mxu1 %v3428_v28  ;;  %2218 = vmatpush1.bf16.msra.mxu1 %v2217_v2  ;;  %v1346_v2 = vld [vmem:[%s4136_s5 + $0x260] sm:$0xff]  ;;  %v3826_v11 = vrot.slane %v823_v10, %v202_v33 }
 0x1c1   :  { %605 = vst [vmem:[%s4134_s11 + $0x1b0] sm:$0xff] %v549_v13  ;;  %2220 = vmatprep.subr.bf16.mxu1 %v2219_v8  ;;  %v1349_v8 = vld [vmem:[%s4136_s5 + $0x278] sm:$0xff] }
 0x1c2   :  { %606 = vst [vmem:[%s4134_s11 + $0x1b8] sm:$0xff] %v550_v4  ;;  %v634_v18 = vmax.f32 %v549_v13, %v550_v4  ;;  %v2321_v9 = vpack.c.bf16 %v1349_v8, %v1348_v6 }
 0x1c3   :  { %1049 = vmatmul.mubr.f32.gmra.mrb[8].mxu1 %v3356_v59 }
 0x1c4   :  { %1054 = vmatprep.mubr.f32.mxu1 %v3482_v16  ;;  %2222 = vmatpush1.bf16.msra.mxu1 %v2221_v35  ;;  %v648_v1 = vmax.f32 %v633_v0, %v634_v18  ;;  %v3822_v0 = vrot.slane %v823_v10, %v198_v31  ;;  %v1307_v10 = vld [vmem:[%s4136_s5 + $0x128] sm:$0xff] }
 0x1c5   :  { %2224 = vmatprep.subr.bf16.mxu1 %v2223_v14 }
 0x1c6   :  { %662 = vst [vmem:[%s4135_s12 + $0x68] sm:$0xff] %v648_v1 }
 0x1c7   :  { %1055 = vmatmul.mubr.f32.gmra.mrb[10].mxu1 %v3428_v28 }
 0x1c8   :  { %1060 = vmatprep.mubr.f32.mxu1 %v3518_v46  ;;  %2226 = vmatpush1.bf16.msra.mxu1 %v2225_v22 }
 0x1c9   :  { %2228 = vmatprep.subr.bf16.mxu1 %v2227_v23 }
 0x1cb   :  { %1061 = vmatmul.mubr.f32.gmra.mrb[12].mxu1 %v3482_v16 }
 0x1cc   :  { %1066 = vmatprep.mubr.f32.mxu1 %v3542_v62  ;;  %2230 = vmatpush1.bf16.msra.mxu1 %v2229_v32 }
 0x1cd   :  { %2232 = vmatprep.subr.bf16.mxu1 %v2231_v36 }
 0x1cf   :  { %1067 = vmatmul.mubr.f32.gmra.mrb[14].mxu1 %v3518_v46 }
 0x1d0   :  { %1072 = vmatprep.mubr.f32.mxu1 %v3592_v26  ;;  %2234 = vmatpush1.bf16.msra.mxu1 %v2233_v42 }
 0x1d3   :  { %1073 = vmatmul.mubr.f32.gmra.mrb[16].mxu1 %v3542_v62 }
 0x1d4   :  { %1078 = vmatprep.mubr.f32.mxu1 %v3643_v3 }
 0x1d7   :  { %1079 = vmatmul.mubr.f32.gmra.mrb[18].mxu1 %v3592_v26 }
 0x1d8   :  { %1149 = vmatprep.mubr.f32.mxu1 %v2428_v39 }
 0x1db   :  { %1150 = vmatmul.mubr.f32.vlgmr.msra.gmra.mrb[0].mxu1 %v3197_v37  ;;  %v1334_v37 = vld [vmem:[%s4136_s5 + $0x200] sm:$0xff] }
 0x1dc   :  { %1155 = vmatprep.mubr.f32.mxu1 %v2428_v39 }
 0x1df   :  { %1156 = vmatmul.mubr.f32.gmra.mrb[2].mxu1 %v3281_v15  ;;  %v1335_v15 = vld [vmem:[%s4136_s5 + $0x208] sm:$0xff] }
 0x1e0   :  { %1161 = vmatprep.mubr.f32.mxu1 %v2428_v39 }
 0x1e3   :  { %1162 = vmatmul.mubr.f32.gmra.mrb[4].mxu1 %v3356_v59  ;;  %v2300_v59 = vpack.c.bf16 %v1335_v15, %v1334_v37 }
 0x1e4   :  { %1167 = vmatprep.mubr.f32.mxu1 %v2428_v39 }
 0x1e7   :  { %1168 = vmatmul.mubr.f32.gmra.mrb[6].mxu1 %v3428_v28  ;;  %v1300_v28 = vld [vmem:[%s4136_s5 + $0xf0] sm:$0xff] }
 0x1e8   :  { %1173 = vmatprep.mubr.f32.mxu1 %v2428_v39 }
 0x1eb   :  { %1174 = vmatmul.mubr.f32.gmra.mrb[8].mxu1 %v3482_v16  ;;  %v1301_v16 = vld [vmem:[%s4136_s5 + $0xf8] sm:$0xff] }
 0x1ec   :  { %1179 = vmatprep.mubr.f32.mxu1 %v2428_v39 }
 0x1ef   :  { %1180 = vmatmul.mubr.f32.gmra.mrb[10].mxu1 %v3518_v46  ;;  %v1284_v46 = vld [vmem:[%s4136_s5 + $0x70] sm:$0xff] }
 0x1f0   :  { %1185 = vmatprep.mubr.f32.mxu1 %v2428_v39  ;;  %v2265_v43 = vpack.c.bf16 %v1285_v40, %v1284_v46  ;;  %v1302_v46 = vld [vmem:[%s4136_s5 + $0x100] sm:$0xff] }
 0x1f3   :  { %1186 = vmatmul.mubr.f32.gmra.mrb[12].mxu1 %v3542_v62  ;;  %v2429_v62 = vmov 0.0|0.0  }
 0x1f4   :  { %1191 = vmatprep.mubr.f32.mxu1 %v2428_v39  ;;  %2299 = vmatprep.subr.bf16.mxu1 %v2429_v62 }
 0x1f5   :  { %2301 = vmatpush3.bf16.msra.mxu1 %v2300_v59 }
 0x1f6   :  { %2302 = vmatprep.subr.bf16.mxu1 %v2429_v62 }
 0x1f7   :  { %1192 = vmatmul.mubr.f32.gmra.mrb[14].mxu1 %v3592_v26  ;;  %v2263_v26 = vpack.c.bf16 %v1301_v16, %v1300_v28 }
 0x1f8   :  { %1197 = vmatprep.mubr.f32.mxu1 %v2428_v39 }
 0x1f9   :  { %2264 = vmatprep.subr.bf16.mxu0 %v2263_v26  ;;  %2304 = vmatpush3.bf16.msra.mxu1 %v2303_v47  ;;  %v1303_v26 = vld [vmem:[%s4136_s5 + $0x108] sm:$0xff] }
 0x1fa   :  { %2266 = vmatpush3.bf16.msra.mxu0 %v2265_v43  ;;  %2305 = vmatprep.subr.bf16.mxu1 %v2429_v62  ;;  %v2269_v51 = vpack.c.bf16 %v1303_v26, %v1302_v46 }
 0x1fb   :  { %1198 = vmatmul.mubr.f32.gmra.mrb[16].mxu1 %v3643_v3  ;;  %2268 = vmatprep.subr.bf16.mxu0 %v2267_v41  ;;  %v1347_v3 = vld [vmem:[%s4136_s5 + $0x268] sm:$0xff] }
 0x1fc   :  { %1203 = vmatprep.mubr.f32.mxu1 %v2428_v39  ;;  %v2318_v5 = vpack.c.bf16 %v1347_v3, %v1346_v2 }
 0x1fd   :  { %2307 = vmatpush3.bf16.msra.mxu1 %v2306_v53 }
 0x1fe   :  { %2308 = vmatprep.subr.bf16.mxu1 %v2429_v62 }
 0x1ff   :  { %1204 = vmatmul.mubr.f32.gmra.mrb[18].mxu1 %v648_v1 }
 0x200   :  { %1974 = vmatprep.mubr.msk.f32.mxu1 %vm2430_vm3, %v2428_v39 }
 0x201   :  { %2310 = vmatpush3.bf16.msra.mxu1 %v2309_v55  ;;  %v1305_v55 = vld [vmem:[%s4136_s5 + $0x118] sm:$0xff] }
 0x202   :  { %2311 = vmatprep.subr.bf16.mxu1 %v2429_v62  ;;  %v2273_v3 = vpack.c.bf16 %v1305_v55, %v1304_v7 }
 0x205   :  { %2313 = vmatpush3.bf16.msra.mxu1 %v2312_v57  ;;  %v1322_v57 = vld [vmem:[%s4136_s5 + $0x1a0] sm:$0xff] }
 0x206   :  { %2314 = vmatprep.subr.bf16.mxu1 %v2429_v62  ;;  %v2275_v8 = vpack.c.bf16 %v1323_v58, %v1322_v57  ;;  %v1332_v58 = vld [vmem:[%s4136_s5 + $0x1f0] sm:$0xff] }
 0x209   :  { %2316 = vmatpush3.bf16.msra.mxu1 %v2315_v63 }
 0x20a   :  { %2317 = vmatprep.subr.bf16.mxu1 %v2429_v62 }
 0x20d   :  { %2319 = vmatpush3.bf16.msra.mxu1 %v2318_v5 }
 0x20e   :  { %2320 = vmatprep.subr.bf16.mxu1 %v2429_v62 }
 0x211   :  { %2322 = vmatpush3.bf16.msra.mxu1 %v2321_v9  ;;  %v1306_v9 = vld [vmem:[%s4136_s5 + $0x120] sm:$0xff] }
 0x212   :  { %2344 = vmatprep.subr.bf16.mxu1 %v2429_v62 }
 0x2ae   :  { %v1151_v34 = vpop.f32.mrb[0].mxu1 }
 0x2af   :  { %v2359_v12 = vadd.f32 %v1151_v34, %v3822_v0  ;;  %v1153_v13 = vpop.f32.mrb[1].mxu1 }
 0x2b0   :  { %v2360_v4 = vadd.f32 %v1153_v13, %v3826_v11  ;;  %v1324_v13 = vld [vmem:[%s4136_s5 + $0x1b0] sm:$0xff] }
 0x2b1   :  { %v1210_v35 = vmax.f32 %v2359_v12, 0.0 }
 0x2b2   :  { %v1211_v14 = vmax.f32 %v2360_v4, 0.0  ;;  %v1157_v61 = vpop.f32.mrb[2].mxu1  ;;  %v1325_v4 = vld [vmem:[%s4136_s5 + $0x1b8] sm:$0xff] }
 0x2b3   :  { %1230 = vst [vmem:[%s4138_s13] sm:$0xff] %v1210_v35  ;;  %v2361_v31 = vadd.f32 %v1157_v61, %v3822_v0  ;;  %v1159_v17 = vpop.f32.mrb[3].mxu1 }
 0x2b4   :  { %1231 = vst [vmem:[%s4138_s13 + $0x8] sm:$0xff] %v1211_v14  ;;  %v1250_v30 = vmax.f32 %v1210_v35, %v1211_v14  ;;  %v2362_v33 = vadd.f32 %v1159_v17, %v3826_v11  ;;  %v2277_v17 = vpack.c.bf16 %v1307_v10, %v1306_v9  ;;  %v1570_v9 = vld [vmem:[%s4140_s7] sm:$0xff]  ;;  %v1571_v10 = vld [vmem:[%s4140_s7 + $0x8] sm:$0xff] }
 0x2b5   :  { %v1212_v18 = vmax.f32 %v2361_v31, 0.0 }
 0x2b6   :  { %v1213_v19 = vmax.f32 %v2362_v33, 0.0  ;;  %v1163_v20 = vpop.f32.mrb[4].mxu1 }
 0x2b7   :  { %1232 = vst [vmem:[%s4138_s13 + $0x10] sm:$0xff] %v1212_v18  ;;  %v2363_v22 = vadd.f32 %v1163_v20, %v3822_v0  ;;  %v1165_v1 = vpop.f32.mrb[5].mxu1  ;;  %v1309_v20 = vld [vmem:[%s4136_s5 + $0x138] sm:$0xff] }
 0x2b8   :  { %1233 = vst [vmem:[%s4138_s13 + $0x18] sm:$0xff] %v1213_v19  ;;  %v1251_v23 = vmax.f32 %v1212_v18, %v1213_v19  ;;  %v2364_v24 = vadd.f32 %v1165_v1, %v3826_v11  ;;  %v2279_v18 = vpack.c.bf16 %v1325_v4, %v1324_v13  ;;  %v1308_v19 = vld [vmem:[%s4136_s5 + $0x130] sm:$0xff]  ;;  %v1573_v13 = vld [vmem:[%s4140_s7 + $0x18] sm:$0xff] }
 0x2b9   :  { %v1214_v25 = vmax.f32 %v2363_v22, 0.0 }
 0x2ba   :  { %v1260_v27 = vmax.f32 %v1250_v30, %v1251_v23  ;;  %v1215_v29 = vmax.f32 %v2364_v24, 0.0  ;;  %v1169_v32 = vpop.f32.mrb[6].mxu1  ;;  %v1326_v23 = vld [vmem:[%s4136_s5 + $0x1c0] sm:$0xff]  ;;  %v1327_v24 = vld [vmem:[%s4136_s5 + $0x1c8] sm:$0xff] }
 0x2bb   :  { %1234 = vst [vmem:[%s4138_s13 + $0x20] sm:$0xff] %v1214_v25  ;;  %v2365_v36 = vadd.f32 %v1169_v32, %v3822_v0  ;;  %v1171_v38 = vpop.f32.mrb[7].mxu1  ;;  %v2281_v32 = vpack.c.bf16 %v1309_v20, %v1308_v19  ;;  %v1580_v20 = vld [vmem:[%s4140_s7 + $0x50] sm:$0xff] }
 0x2bc   :  { %1265 = vst [vmem:[%s4139_s14] sm:$0xff] %v1260_v27  ;;  %1235 = vst [vmem:[%s4138_s13 + $0x28] sm:$0xff] %v1215_v29  ;;  %v1252_v21 = vmax.f32 %v1214_v25, %v1215_v29  ;;  %v2366_v42 = vadd.f32 %v1171_v38, %v3826_v11 }
 0x2bd   :  { %v1216_v37 = vmax.f32 %v2365_v36, 0.0 }
 0x2be   :  { %v1217_v15 = vmax.f32 %v2366_v42, 0.0  ;;  %v1175_v59 = vpop.f32.mrb[8].mxu1  ;;  %v1310_v42 = vld [vmem:[%s4136_s5 + $0x140] sm:$0xff] }
 0x2bf   :  { %1236 = vst [vmem:[%s4138_s13 + $0x30] sm:$0xff] %v1216_v37  ;;  %v2367_v28 = vadd.f32 %v1175_v59, %v3822_v0  ;;  %v1177_v16 = vpop.f32.mrb[9].mxu1 }
 0x2c0   :  { %1237 = vst [vmem:[%s4138_s13 + $0x38] sm:$0xff] %v1217_v15  ;;  %v1253_v40 = vmax.f32 %v1216_v37, %v1217_v15  ;;  %v2368_v43 = vadd.f32 %v1177_v16, %v3826_v11  ;;  %v1311_v37 = vld [vmem:[%s4136_s5 + $0x148] sm:$0xff]  ;;  %v1329_v16 = vld [vmem:[%s4136_s5 + $0x1d8] sm:$0xff] }
 0x2c1   :  { %v1218_v47 = vmax.f32 %v2367_v28, 0.0  ;;  %v1328_v28 = vld [vmem:[%s4136_s5 + $0x1d0] sm:$0xff]  ;;  %v2285_v44 = vpack.c.bf16 %v1311_v37, %v1310_v42  ;;  %v1672_v37 = vld [vmem:[%s4141_s9 + $0x20] sm:$0xff] }
 0x2c2   :  { %v1219_v49 = vmax.f32 %v2368_v43, 0.0  ;;  %v1181_v50 = vpop.f32.mrb[10].mxu1  ;;  %v1261_v41 = vmax.f32 %v1252_v21, %v1253_v40  ;;  %v2283_v21 = vpack.c.bf16 %v1327_v24, %v1326_v23  ;;  %v1582_v23 = vld [vmem:[%s4140_s7 + $0x60] sm:$0xff]  ;;  %v1583_v24 = vld [vmem:[%s4140_s7 + $0x68] sm:$0xff] }
 0x2c3   :  { %1238 = vst [vmem:[%s4138_s13 + $0x40] sm:$0xff] %v1218_v47  ;;  %v2369_v52 = vadd.f32 %v1181_v50, %v3822_v0  ;;  %v1183_v53 = vpop.f32.mrb[11].mxu1  ;;  %v1312_v50 = vld [vmem:[%s4136_s5 + $0x150] sm:$0xff] }
 0x2c4   :  { %1239 = vst [vmem:[%s4138_s13 + $0x48] sm:$0xff] %v1219_v49  ;;  %v1254_v56 = vmax.f32 %v1218_v47, %v1219_v49  ;;  %v2370_v48 = vadd.f32 %v1183_v53, %v3826_v11  ;;  %1266 = vst [vmem:[%s4139_s14 + $0x8] sm:$0xff] %v1261_v41  ;;  %1421 = vmatprep.mubr.f32.mxu0 %v1261_v41  ;;  %v2287_v49 = vpack.c.bf16 %v1329_v16, %v1328_v28  ;;  %v1313_v41 = vld [vmem:[%s4136_s5 + $0x158] sm:$0xff]  ;;  %v1331_v53 = vld [vmem:[%s4136_s5 + $0x1e8] sm:$0xff] }
 0x2c5   :  { %v1220_v60 = vmax.f32 %v2369_v52, 0.0  ;;  %1422 = vmatmul.mubr.f32.vlgmr.msra.gmra.mrb[56].mxu0 %v1260_v27  ;;  %v2289_v55 = vpack.c.bf16 %v1313_v41, %v1312_v50  ;;  %v1674_v28 = vld [vmem:[%s4141_s9 + $0x30] sm:$0xff]  ;;  %v1675_v16 = vld [vmem:[%s4141_s9 + $0x38] sm:$0xff] }
 0x2c6   :  { %v1221_v63 = vmax.f32 %v2370_v48, 0.0  ;;  %2270 = vmatpush3.bf16.msra.mxu0 %v2269_v51  ;;  %v1187_v2 = vpop.f32.mrb[12].mxu1  ;;  %v1315_v48 = vld [vmem:[%s4136_s5 + $0x168] sm:$0xff] }
 0x2c7   :  { %1240 = vst [vmem:[%s4138_s13 + $0x50] sm:$0xff] %v1220_v60  ;;  %v2371_v5 = vadd.f32 %v1187_v2, %v3822_v0  ;;  %v1189_v6 = vpop.f32.mrb[13].mxu1  ;;  %2272 = vmatprep.subr.bf16.mxu0 %v2271_v54 }
 0x2c8   :  { %1241 = vst [vmem:[%s4138_s13 + $0x58] sm:$0xff] %v1221_v63  ;;  %v1255_v34 = vmax.f32 %v1220_v60, %v1221_v63  ;;  %v2372_v12 = vadd.f32 %v1189_v6, %v3826_v11  ;;  %v1333_v60 = vld [vmem:[%s4136_s5 + $0x1f8] sm:$0xff] }
 0x2c9   :  { %v1222_v35 = vmax.f32 %v2371_v5, 0.0  ;;  %v1316_v5 = vld [vmem:[%s4136_s5 + $0x170] sm:$0xff]  ;;  %v1317_v6 = vld [vmem:[%s4136_s5 + $0x178] sm:$0xff] }
 0x2ca   :  { %v3920_v14 = vmax.f32 %v1254_v56, %v1255_v34  ;;  %v1223_v61 = vmax.f32 %v2372_v12, 0.0  ;;  %2274 = vmatpush3.bf16.msra.mxu0 %v2273_v3  ;;  %v1193_v31 = vpop.f32.mrb[14].mxu1  ;;  %v1314_v56 = vld [vmem:[%s4136_s5 + $0x160] sm:$0xff]  ;;  %v2295_v3 = vpack.c.bf16 %v1333_v60, %v1332_v58  ;;  %v1572_v34 = vld [vmem:[%s4140_s7 + $0x10] sm:$0xff]  ;;  %v2324_v12 = vpack.c.bf16 %v1571_v10, %v1570_v9 }
 0x2cb   :  { %1242 = vst [vmem:[%s4138_s13 + $0x60] sm:$0xff] %v1222_v35  ;;  %v2373_v30 = vadd.f32 %v1193_v31, %v3822_v0  ;;  %v1195_v33 = vpop.f32.mrb[15].mxu1  ;;  %2276 = vmatprep.subr.bf16.mxu0 %v2275_v8  ;;  %v2293_v2 = vpack.c.bf16 %v1315_v48, %v1314_v56  ;;  %v2297_v8 = vpack.c.bf16 %v1317_v6, %v1316_v5  ;;  %v1576_v31 = vld [vmem:[%s4140_s7 + $0x30] sm:$0xff] }
 0x2cc   :  { %1267 = vst [vmem:[%s4139_s14 + $0x10] sm:$0xff] %v3920_v14  ;;  %1243 = vst [vmem:[%s4138_s13 + $0x68] sm:$0xff] %v1223_v61  ;;  %v1256_v22 = vmax.f32 %v1222_v35, %v1223_v61  ;;  %v2374_v1 = vadd.f32 %v1195_v33, %v3826_v11  ;;  %v2327_v4 = vpack.c.bf16 %v1573_v13, %v1572_v34  ;;  %v1574_v35 = vld [vmem:[%s4140_s7 + $0x20] sm:$0xff] }
 0x2cd   :  { %v1224_v25 = vmax.f32 %v2373_v30, 0.0  ;;  %v1578_v33 = vld [vmem:[%s4140_s7 + $0x40] sm:$0xff] }
 0x2ce   :  { %v1225_v27 = vmax.f32 %v2374_v1, 0.0  ;;  %2278 = vmatpush3.bf16.msra.mxu0 %v2277_v17  ;;  %v1199_v29 = vpop.f32.mrb[16].mxu1  ;;  %v1577_v17 = vld [vmem:[%s4140_s7 + $0x38] sm:$0xff] }
 0x2cf   :  { %1244 = vst [vmem:[%s4138_s13 + $0x70] sm:$0xff] %v1224_v25  ;;  %v2375_v36 = vadd.f32 %v1199_v29, %v3822_v0  ;;  %v1201_v38 = vpop.f32.mrb[17].mxu1  ;;  %2280 = vmatprep.subr.bf16.mxu0 %v2279_v18  ;;  %v2333_v30 = vpack.c.bf16 %v1577_v17, %v1576_v31  ;;  %v1579_v18 = vld [vmem:[%s4140_s7 + $0x48] sm:$0xff]  ;;  %v1668_v29 = vld [vmem:[%s4141_s9] sm:$0xff] }
 0x2d0   :  { %1245 = vst [vmem:[%s4138_s13 + $0x78] sm:$0xff] %v1225_v27  ;;  %v1257_v15 = vmax.f32 %v1224_v25, %v1225_v27  ;;  %v2376_v59 = vadd.f32 %v1201_v38, %v3826_v11  ;;  %v2336_v19 = vpack.c.bf16 %v1579_v18, %v1578_v33  ;;  %v2342_v25 = vpack.c.bf16 %v1583_v24, %v1582_v23  ;;  %v1584_v27 = vld [vmem:[%s4140_s7 + $0x70] sm:$0xff] }
 0x2d1   :  { %v1226_v46 = vmax.f32 %v2375_v36, 0.0  ;;  %v1670_v36 = vld [vmem:[%s4141_s9 + $0x10] sm:$0xff] }
 0x2d2   :  { %v1227_v26 = vmax.f32 %v2376_v59, 0.0  ;;  %2282 = vmatpush3.bf16.msra.mxu0 %v2281_v32  ;;  %v1205_v40 = vpop.f32.mrb[18].mxu1  ;;  %v1263_v43 = vmax.f32 %v1256_v22, %v1257_v15  ;;  %v1581_v22 = vld [vmem:[%s4140_s7 + $0x58] sm:$0xff]  ;;  %v1669_v32 = vld [vmem:[%s4141_s9 + $0x8] sm:$0xff] }
 0x2d3   :  { %1246 = vst [vmem:[%s4138_s13 + $0x80] sm:$0xff] %v1226_v46  ;;  %v2377_v45 = vadd.f32 %v1205_v40, %v3822_v0  ;;  %v1207_v47 = vpop.f32.mrb[19].mxu1  ;;  %2284 = vmatprep.subr.bf16.mxu0 %v2283_v21  ;;  %v1330_v0 = vld [vmem:[%s4136_s5 + $0x1e0] sm:$0xff]  ;;  %v2339_v1 = vpack.c.bf16 %v1581_v22, %v1580_v20  ;;  %v2345_v38 = vpack.c.bf16 %v1669_v32, %v1668_v29  ;;  %v1671_v21 = vld [vmem:[%s4141_s9 + $0x18] sm:$0xff]  ;;  %v1673_v15 = vld [vmem:[%s4141_s9 + $0x28] sm:$0xff] }
 0x2d4   :  { %1247 = vst [vmem:[%s4138_s13 + $0x88] sm:$0xff] %v1227_v26  ;;  %v1258_v51 = vmax.f32 %v1226_v46, %v1227_v26  ;;  %v2378_v52 = vadd.f32 %v1207_v47, %v3826_v11  ;;  %1268 = vst [vmem:[%s4139_s14 + $0x18] sm:$0xff] %v1263_v43  ;;  %1491 = vmatprep.mubr.f32.mxu0 %v1263_v43  ;;  %v2291_v11 = vpack.c.bf16 %v1331_v53, %v1330_v0  ;;  %v1821_v47 = vld [vmem:[%s4142_s6] ss:$0 sm:$0xff] }
 0x2d5   :  { %v1228_v54 = vmax.f32 %v2377_v45, 0.0  ;;  %v2348_v42 = vpack.c.bf16 %v1671_v21, %v1670_v36  ;;  %v2351_v59 = vpack.c.bf16 %v1673_v15, %v1672_v37  ;;  %v2354_v46 = vpack.c.bf16 %v1675_v16, %v1674_v28 }
 0x2d6   :  { %v1229_v7 = vmax.f32 %v2378_v52, 0.0  ;;  %2286 = vmatpush3.bf16.msra.mxu0 %v2285_v44 }
 0x2d7   :  { %1248 = vst [vmem:[%s4138_s13 + $0x90] sm:$0xff] %v1228_v54  ;;  %2288 = vmatprep.subr.bf16.mxu0 %v2287_v49 }
 0x2d8   :  { %1249 = vst [vmem:[%s4138_s13 + $0x98] sm:$0xff] %v1229_v7  ;;  %v1259_v57 = vmax.f32 %v1228_v54, %v1229_v7  ;;  %v1677_v54 = vld [vmem:[%s4141_s9 + $0x48] sm:$0xff] }
 0x2da   :  { %v1264_v63 = vmax.f32 %v1258_v51, %v1259_v57  ;;  %2290 = vmatpush3.bf16.msra.mxu0 %v2289_v55  ;;  %v1678_v55 = vld [vmem:[%s4141_s9 + $0x50] sm:$0xf] }
 0x2db   :  { %2292 = vmatprep.subr.bf16.mxu0 %v2291_v11  ;;  %v1822_v11 = vld [vmem:[%s4144_s8] ss:$0 sm:$0xff] }
 0x2dc   :  { %1269 = vst [vmem:[%s4139_s14 + $0x20] sm:$0xff] %v1264_v63  ;;  %1975 = vmatmul.mubr.f32.vlgmr.msra.gmra.mrb[20].mxu1 %v1264_v63 }
 0x2dd   :  { %2032 = vmatprep.mubr.msk.f32.mxu1 %vm2430_vm3, %v2428_v39  ;;  %2346 = vmatpush3.bf16.msra.mxu1 %v2345_v38 }
 0x2de   :  { %2294 = vmatpush3.bf16.msra.mxu0 %v2293_v2  ;;  %2347 = vmatprep.subr.bf16.mxu1 %v2429_v62 }
 0x2df   :  { %2296 = vmatprep.subr.bf16.mxu0 %v2295_v3 }
 0x2e1   :  { %2349 = vmatpush3.bf16.msra.mxu1 %v2348_v42 }
 0x2e2   :  { %2298 = vmatpush3.bf16.msra.mxu0 %v2297_v8  ;;  %2350 = vmatprep.subr.bf16.mxu1 %v2429_v62 }
 0x2e3   :  { %2323 = vmatprep.subr.bf16.mxu0 %v2429_v62 }
 0x2e5   :  { %1492 = vmatmul.mubr.f32.vlgmr.msra.gmra.mrb[58].mxu0 %v3920_v14  ;;  %v1575_v14 = vld [vmem:[%s4140_s7 + $0x28] sm:$0xff]  ;;  %2352 = vmatpush3.bf16.msra.mxu1 %v2351_v59 }
 0x2e6   :  { %2007 = vmatprep.mubr.msk.f32.mxu0 %vm2430_vm3, %v2428_v39  ;;  %2325 = vmatpush3.bf16.msra.mxu0 %v2324_v12  ;;  %v2330_v61 = vpack.c.bf16 %v1575_v14, %v1574_v35 }
 0x2e7   :  { %2326 = vmatprep.subr.bf16.mxu0 %v2429_v62  ;;  %2353 = vmatprep.subr.bf16.mxu1 %v2429_v62 }
 0x2e9   :  { %2355 = vmatpush3.bf16.msra.mxu1 %v2354_v46 }
 0x2ea   :  { %2328 = vmatpush3.bf16.msra.mxu0 %v2327_v4  ;;  %2356 = vmatprep.subr.bf16.mxu1 %v2429_v62 }
 0x2eb   :  { %2329 = vmatprep.subr.bf16.mxu0 %v2429_v62 }
 0x2ee   :  { %2331 = vmatpush3.bf16.msra.mxu0 %v2330_v61 }
 0x2ef   :  { %2332 = vmatprep.subr.bf16.mxu0 %v2429_v62 }
 0x2f2   :  { %2334 = vmatpush3.bf16.msra.mxu0 %v2333_v30 }
 0x2f3   :  { %2335 = vmatprep.subr.bf16.mxu0 %v2429_v62 }
 0x2f6   :  { %2337 = vmatpush3.bf16.msra.mxu0 %v2336_v19 }
 0x2f7   :  { %2338 = vmatprep.subr.bf16.mxu0 %v2429_v62 }
 0x2fa   :  { %2340 = vmatpush3.bf16.msra.mxu0 %v2339_v1 }
 0x2fb   :  { %2341 = vmatprep.subr.bf16.mxu0 %v2429_v62  ;;  %v1676_v62 = vld [vmem:[%s4141_s9 + $0x40] sm:$0xff] }
 0x2fc   :  { %v2357_v7 = vpack.c.bf16 %v1677_v54, %v1676_v62 }
 0x2fe   :  { %2343 = vmatpush3.bf16.msra.mxu0 %v2342_v25  ;;  %2358 = vmatpush3.bf16.msra.mxu1 %v2357_v7 }
 0x2ff   :  { %2005 = vmatprep.subr.mxu0 %v2428_v39  ;;  %2030 = vmatprep.subr.mxu1 %v2428_v39  ;;  %v1824_v39 = vld [vmem:[%s4146_s10] ss:$0 sm:$0xff] }
 0x302   :  { %2006 = vmatpush3.msra.mxu0 %v1584_v27  ;;  %2031 = vmatpush3.msk.msra.mxu1 %vm1689_vm5, %v1678_v55 }
 0x398   :  { %v1859_v26 = vpop.f32.mrb[56].mxu0 }
 0x399   :  { %v1860_v40 = vpop.f32.mrb[57].mxu0 }
 0x39a   :  { %v1861_v43 = vadd.f32 %v1860_v40, %v1859_v26 }
 0x39c   :  { %v1424_v41 = vadd.f32 %v1861_v43, %v1821_v47 }
 0x3af   :  { %v1563_v44 = vpop.f32.mrb[20].mxu1 }
 0x3b0   :  { %v1976_v45 = vpop.f32.mrb[21].mxu1 }
 0x3b8   :  { %v1894_v49 = vpop.f32.mrb[58].mxu0 }
 0x3b9   :  { %v1895_v50 = vpop.f32.mrb[59].mxu0 }
 0x3ba   :  { %v1896_v51 = vadd.f32 %v1895_v50, %v1894_v49 }
 0x3bc   :  { %v1494_v52 = vadd.f32 %v1896_v51, %v1424_v41 }
 0x3be   :  { %v1564_v0 = vadd.f32 %v1563_v44, %v1494_v52 }
 0x3c0   :  { %v1567_v53 = vmax.f32 %v1564_v0, 0.0 }
 0x3c2   :  { %1569 = vst.msk [vmem:[%s4143_s15] sm:$0xff] %vm1568_vm4, %v1567_v53  ;;  %2008 = vmatmul.mubr.msk.f32.vlgmr.msra.gmra.mrb[60].mxu0 %vm1568_vm4, %v1567_v53 }
 0x495   :  { %v1661_v56 = vpop.f32.mrb[60].mxu0 }
 0x496   :  { %v1662_v48 = vadd.f32 %v1822_v11, %v1661_v56  ;;  %v2009_v57 = vpop.f32.mrb[61].mxu0 }
 0x498   :  { %v1665_v58 = vmax.f32 %v1662_v48, 0.0 }
 0x49a   :  { %1667 = vst.msk [vmem:[%s4145_s16] sm:$0xff] %vm1666_vm6, %v1665_v58  ;;  %2033 = vmatmul.mubr.msk.f32.vlgmr.msra.gmra.mrb[22].mxu1 %vm1666_vm6, %v1665_v58 }
 0x56d   :  { %v1759_v60 = vpop.f32.mrb[22].mxu1 }
 0x56e   :  { %v1760_v63 = vadd.f32 %v1824_v39, %v1759_v60  ;;  %v2034_v2 = vpop.f32.mrb[23].mxu1 }
 0x570   :  { %1764 = vst.msk [vmem:[%s4147_s17] sm:$0xff] %vm1763_vm7, %v1760_v63 }

</bundles_post_ra>
